<compile_context>
chip_gen: v7x
topology: tpu7x:2x2x1
jax: 0.10.0
libtpu: 0.0.40
codegen_flags: <defaults>
</compile_context>

<pallas_src>
import functools

import jax
import jax.numpy as jnp
from jax import lax
from jax.experimental import pallas as pl
from jax.experimental.pallas import tpu as pltpu


def gat_kernel(x_ref, adj_ref, wlast_ref, wa1_ref, wa2_ref, out_ref, *,
               n_head, n_type, d, bn, E, shared_wa):
    """block_n batch samples per step; heads/types fused into wide matmuls.

    x_ref    : (bn, E, in_dim)  f32
    adj_ref  : (bn, E, E)       int8   (0 = no edge, 1..T = edge type)
    wlast_ref: (in_dim, H*d)    f32    last-edge-type projection, all heads
    wa1_ref  : (bn|1, in_dim, HT) f32  composed score proj (source side)
    wa2_ref  : (bn|1, in_dim, HT) f32  composed score proj (target side)
    out_ref  : (bn, E, H*d)     f32
    """
    H, T = n_head, n_type
    HT = H * T
    in_dim = x_ref.shape[-1]

    x_all = x_ref[...].reshape(bn * E, in_dim)
    # Last-edge-type projection for all heads and all samples: one MXU pass.
    h_last_all = jnp.dot(x_all, wlast_ref[...],
                         preferred_element_type=jnp.float32)        # (bn*E, H*d)

    if shared_wa:
        # q_attn=False: Wa is batch-independent -> one matmul for all samples.
        scol_all = lax.dot_general(wa1_ref[0], x_all,
                                   (((0,), (1,)), ((), ())),
                                   preferred_element_type=jnp.float32)  # (HT, bn*E)
        srow_all = lax.dot_general(wa2_ref[0], x_all,
                                   (((0,), (1,)), ((), ())),
                                   preferred_element_type=jnp.float32)  # (HT, bn*E)

    for b in range(bn):                                             # static, small
        adj_b = adj_ref[b].astype(jnp.int32)                        # (E, E)

        if shared_wa:
            scol_t = scol_all[:, b * E:(b + 1) * E]                 # (HT, E)
            srow_t = srow_all[:, b * E:(b + 1) * E]                 # (HT, E)
        else:
            x_b = x_all[b * E:(b + 1) * E]                          # (E, in_dim)
            scol_t = lax.dot_general(wa1_ref[b], x_b,
                                     (((0,), (1,)), ((), ())),
                                     preferred_element_type=jnp.float32)  # (HT, E)
            srow_t = lax.dot_general(wa2_ref[b], x_b,
                                     (((0,), (1,)), ((), ())),
                                     preferred_element_type=jnp.float32)  # (HT, E)

        # raw[j, p, q] = s1[j, p] + s2[j, q]  for j = head*T + type
        raw = scol_t[:, :, None] + srow_t[:, None, :]               # (HT, E, E)
        raw = jnp.where(raw > 0, raw, 0.2 * raw)                    # lrelu(0.2) once
        raw = raw.reshape(H, T, E, E)

        # One-hot over edge types, summed over T -> per-head scores.
        type_ids = lax.broadcasted_iota(jnp.int32, (T, E, E), 0) + 1
        tmask = adj_b[None, :, :] == type_ids                       # (T, E, E)
        scores = jnp.sum(jnp.where(tmask[None], raw, 0.0), axis=1)  # (H, E, E)
        scores = jnp.where(adj_b[None, :, :] > 0, scores,
                           jnp.float32(-1e30))

        # softmax over q (dim=2 of the (N,E,E) reference) — exact normalization.
        m = jnp.max(scores, axis=-1, keepdims=True)
        p = jnp.exp(scores - m)
        coefs = p / jnp.sum(p, axis=-1, keepdims=True)              # (H, E, E)

        h_last_b = h_last_all[b * E:(b + 1) * E]                    # (E, H*d)
        for hd in range(H):                                         # static, H=4
            # out[q, k] = sum_p coefs[hd, p, q] * h_last_b[p, hd*d + k]
            out_hd = lax.dot_general(
                coefs[hd], h_last_b[:, hd * d:(hd + 1) * d],
                (((0,), (0,)), ((), ())),
                preferred_element_type=jnp.float32)                 # (E, d)
            out_ref[b, :, hd * d:(hd + 1) * d] = jnp.maximum(
                out_hd, 0.0).astype(out_ref.dtype)


def _choose_block_n(N, E):
    """Largest divisor of N keeping bn*E rows modest (single grid step when the
    whole batch fits; extra steps are pure overhead on single-TC v5e/v6e)."""
    max_rows = 512
    best = 1
    for bn in range(1, N + 1):
        if N % bn == 0 and bn * E <= max_rows:
            best = bn
    return best


def attention_layer_forward(x, adj, query_vec, W, a, qW1, qW2, *, q_attn,
                            block_n=None):
    H, T, in_dim, d = W.shape
    N, E, _ = x.shape
    HT = H * T

    adj_i8 = adj.astype(jnp.int8)

    a1 = a[:, :, 0, :d]                                             # (H, T, d)
    a2 = a[:, :, 0, d:]                                             # (H, T, d)

    if q_attn:
        g = jax.nn.relu(jnp.einsum('nc,htco->nhto', query_vec, qW1))
        g = jax.nn.sigmoid(jnp.einsum('nhto,htop->nhtp', g, qW2))   # (N,H,T,2d)
        av1 = a1[None] * g[..., :d]                                 # (N,H,T,d)
        av2 = a2[None] * g[..., d:]                                 # (N,H,T,d)
        # Compose score projections into input space:
        #   Wa1[n, c, h*T+t] = sum_k W[h,t,c,k] * av1[n,h,t,k]
        Wa1 = jnp.einsum('htck,nhtk->ncht', W, av1).reshape(N, in_dim, HT)
        Wa2 = jnp.einsum('htck,nhtk->ncht', W, av2).reshape(N, in_dim, HT)
        shared_wa = False
    else:
        Wa1 = jnp.einsum('htck,htk->cht', W, a1).reshape(1, in_dim, HT)
        Wa2 = jnp.einsum('htck,htk->cht', W, a2).reshape(1, in_dim, HT)
        shared_wa = True

    # Only the LAST edge type's projection feeds the aggregation (reference
    # overwrites h in its type loop).  Columns ordered (head, k).
    W_last = jnp.transpose(W[:, T - 1], (1, 0, 2)).reshape(in_dim, H * d)

    if block_n is None:
        block_n = _choose_block_n(N, E)
    grid = (N // block_n,)

    if shared_wa:
        wa_block, wa_map = (1, in_dim, HT), (lambda n: (0, 0, 0))
    else:
        wa_block, wa_map = (block_n, in_dim, HT), (lambda n: (n, 0, 0))

    kernel = functools.partial(gat_kernel, n_head=H, n_type=T, d=d,
                               bn=block_n, E=E, shared_wa=shared_wa)
    out = pl.pallas_call(
        kernel,
        out_shape=jax.ShapeDtypeStruct((N, E, H * d), jnp.float32),
        grid=grid,
        in_specs=[
            pl.BlockSpec((block_n, E, in_dim), lambda n: (n, 0, 0)),
            pl.BlockSpec((block_n, E, E), lambda n: (n, 0, 0)),
            pl.BlockSpec((in_dim, H * d), lambda n: (0, 0)),
            pl.BlockSpec(wa_block, wa_map),
            pl.BlockSpec(wa_block, wa_map),
        ],
        out_specs=pl.BlockSpec((block_n, E, H * d), lambda n: (n, 0, 0)),
        compiler_params=pltpu.CompilerParams(
            dimension_semantics=("parallel",)),
    )(x, adj_i8, W_last, Wa1, Wa2)
    return out                                                      # (N, E, H*d)


def reference_forward(x, adj, query_vec, W, a, qW1, qW2, *, q_attn):
    """Pure-JAX replica of the PyTorch forward (eval mode) for validation."""
    n_head, n_type, _, d = W.shape
    N, E, _ = x.shape
    outs = []
    for hd in range(n_head):
        scores = jnp.zeros((N, E, E), jnp.float32)
        h = None
        for i in range(n_type):
            h = x @ W[hd, i]                                        # (N, E, d)
            a_vec = a[hd, i, 0]
            a1, a2 = a_vec[:d], a_vec[d:]
            if q_attn:
                g = jax.nn.relu(query_vec @ qW1[hd, i])
                g = jax.nn.sigmoid(g @ qW2[hd, i])                  # (N, 2d)
                g1, g2 = g[:, :d], g[:, d:]
            else:
                g1 = g2 = jnp.ones((N, d), jnp.float32)
            s1 = jnp.sum(h * g1[:, None, :] * a1, -1)               # (N, E)
            s2 = jnp.sum(h * g2[:, None, :] * a2, -1)               # (N, E)
            raw = s1[:, :, None] + s2[:, None, :]
            score = jnp.where(raw > 0, raw, 0.2 * raw)
            scores = scores + jnp.where(adj == i + 1, score, 0.0)
        scores = jnp.where(adj > 0, scores, -1e30)
        coefs = jax.nn.softmax(scores, axis=2)
        outs.append(jnp.einsum('npq,npk->nqk', coefs, h))
    return jax.nn.relu(jnp.concatenate(outs, axis=-1))


if __name__ == "__main__":
    # Small shapes consistent with the module
    N, E = 2, 16                 # batch, num nodes
    in_dim, hid_dim = 32, 32
    n_head = 4
    d = hid_dim // n_head        # out_dim per head = 8
    n_type = 3                   # config.num_edge_type

    key = jax.random.PRNGKey(0)
    ks = jax.random.split(key, 8)

    x = jax.random.normal(ks[0], (N, E, in_dim), jnp.float32)
    adj = jax.random.randint(ks[1], (N, E, E), 0, n_type + 1, dtype=jnp.int32)
    query_vec = jax.random.normal(ks[2], (N, in_dim), jnp.float32)

    def init(k, shape, fan_in, fan_out):
        return jax.random.normal(k, shape, jnp.float32) * jnp.sqrt(
            2.0 / (fan_in + fan_out))

    W = init(ks[3], (n_head, n_type, in_dim, d), in_dim, d)
    a = init(ks[4], (n_head, n_type, 1, 2 * d), 2 * d, 1)
    qW1 = init(ks[5], (n_head, n_type, in_dim, 2 * d), in_dim, 2 * d)
    qW2 = init(ks[6], (n_head, n_type, 2 * d, 2 * d), 2 * d, 2 * d)

    for q_attn in (True, False):
        out = attention_layer_forward(x, adj, query_vec, W, a, qW1, qW2,
                                      q_attn=q_attn)
        out = jax.block_until_ready(out)
        ref = reference_forward(x, adj, query_vec, W, a, qW1, qW2,
                                q_attn=q_attn)
        assert out.shape == (N, E, hid_dim)
        err = jnp.max(jnp.abs(out - ref))
        assert jnp.allclose(out, ref, atol=1e-3, rtol=1e-3), (
            f"q_attn={q_attn}: max abs err {err}")
    print("KERNEL_OK")
</pallas_src>

<mosaic_0001>
module attributes {stable_mosaic.version = 11 : i64} {
  func.func @gat_kernel(%arg0: i32, %arg1: memref<2x16x32xf32, #tpu.memory_space<vmem>>, %arg2: memref<2x16x16xi8, #tpu.memory_space<vmem>>, %arg3: memref<32x32xf32, #tpu.memory_space<vmem>>, %arg4: memref<2x32x12xf32, #tpu.memory_space<vmem>>, %arg5: memref<2x32x12xf32, #tpu.memory_space<vmem>>, %arg6: memref<2x16x32xf32, #tpu.memory_space<vmem>>) attributes {dimension_semantics = [#tpu.dimension_semantics<parallel>], iteration_bounds = array<i64: 1>, scalar_prefetch = 0 : i64, scratch_operands = 0 : i64, tpu.core_type = #tpu.core_type<tc>, window_params = [{transform_indices = @transform_0, window_bounds = array<i64: 2, 16, 32>}, {transform_indices = @transform_1, window_bounds = array<i64: 2, 16, 16>}, {pipeline_mode = #tpu.pipeline_mode<synchronous>, transform_indices = @transform_2, window_bounds = array<i64: 32, 32>}, {transform_indices = @transform_3, window_bounds = array<i64: 2, 32, 12>}, {transform_indices = @transform_4, window_bounds = array<i64: 2, 32, 12>}, {transform_indices = @transform_5, window_bounds = array<i64: 2, 16, 32>}]} {
    %c0 = arith.constant 0 : index
    %c0_0 = arith.constant 0 : index
    %c0_1 = arith.constant 0 : index
    %0 = vector.load %arg1[%c0, %c0_0, %c0_1] : memref<2x16x32xf32, #tpu.memory_space<vmem>>, vector<2x16x32xf32>
    %1 = vector.shape_cast %0 : vector<2x16x32xf32> to vector<32x32xf32>
    %c0_2 = arith.constant 0 : index
    %c0_3 = arith.constant 0 : index
    %2 = vector.load %arg3[%c0_2, %c0_3] : memref<32x32xf32, #tpu.memory_space<vmem>>, vector<32x32xf32>
    %cst = arith.constant dense<0.000000e+00> : vector<32x32xf32>
    %3 = tpu.matmul %1, %2, %cst {dimension_numbers = #tpu.dot_dimension_numbers<[1], [0], [0], [1], [0, 0, 1, 1], [], []>} : vector<32x32xf32>, vector<32x32xf32>, vector<32x32xf32> -> vector<32x32xf32>
    %c0_4 = arith.constant 0 : index
    %c0_5 = arith.constant 0 : index
    %c0_6 = arith.constant 0 : index
    %4 = vector.load %arg2[%c0_4, %c0_5, %c0_6] : memref<2x16x16xi8, #tpu.memory_space<vmem>>, vector<1x16x16xi8>
    %5 = vector.shape_cast %4 : vector<1x16x16xi8> to vector<16x16xi8>
    %6 = arith.extsi %5 : vector<16x16xi8> to vector<16x16xi32>
    %7 = vector.extract_strided_slice %1 {offsets = [0, 0], sizes = [16, 32], strides = [1, 1]} : vector<32x32xf32> to vector<16x32xf32>
    %c0_7 = arith.constant 0 : index
    %c0_8 = arith.constant 0 : index
    %c0_9 = arith.constant 0 : index
    %8 = vector.load %arg4[%c0_7, %c0_8, %c0_9] : memref<2x32x12xf32, #tpu.memory_space<vmem>>, vector<1x32x12xf32>
    %9 = vector.shape_cast %8 : vector<1x32x12xf32> to vector<32x12xf32>
    %cst_10 = arith.constant dense<0.000000e+00> : vector<12x16xf32>
    %10 = tpu.matmul %9, %7, %cst_10 {dimension_numbers = #tpu.dot_dimension_numbers<[0], [1], [1], [0], [0, 1, 1, 0], [], []>} : vector<32x12xf32>, vector<16x32xf32>, vector<12x16xf32> -> vector<12x16xf32>
    %c0_11 = arith.constant 0 : index
    %c0_12 = arith.constant 0 : index
    %c0_13 = arith.constant 0 : index
    %11 = vector.load %arg5[%c0_11, %c0_12, %c0_13] : memref<2x32x12xf32, #tpu.memory_space<vmem>>, vector<1x32x12xf32>
    %12 = vector.shape_cast %11 : vector<1x32x12xf32> to vector<32x12xf32>
    %cst_14 = arith.constant dense<0.000000e+00> : vector<12x16xf32>
    %13 = tpu.matmul %12, %7, %cst_14 {dimension_numbers = #tpu.dot_dimension_numbers<[0], [1], [1], [0], [0, 1, 1, 0], [], []>} : vector<32x12xf32>, vector<16x32xf32>, vector<12x16xf32> -> vector<12x16xf32>
    %14 = vector.shape_cast %10 : vector<12x16xf32> to vector<12x16x1xf32>
    %15 = vector.shape_cast %13 : vector<12x16xf32> to vector<12x1x16xf32>
    %16 = vector.broadcast %14 : vector<12x16x1xf32> to vector<12x16x16xf32>
    %17 = vector.broadcast %15 : vector<12x1x16xf32> to vector<12x16x16xf32>
    %18 = arith.addf %16, %17 : vector<12x16x16xf32>
    %cst_15 = arith.constant 0.000000e+00 : f32
    %19 = vector.broadcast %cst_15 : f32 to vector<12x16x16xf32>
    %20 = arith.cmpf ogt, %18, %19 : vector<12x16x16xf32>
    %cst_16 = arith.constant 2.000000e-01 : f32
    %21 = vector.broadcast %cst_16 : f32 to vector<12x16x16xf32>
    %22 = arith.mulf %21, %18 : vector<12x16x16xf32>
    %23 = arith.select %20, %18, %22 : vector<12x16x16xi1>, vector<12x16x16xf32>
    %24 = vector.shape_cast %23 : vector<12x16x16xf32> to vector<4x3x16x16xf32>
    %25 = tpu.iota {dimensions = array<i32: 0>} : vector<3x16x16xi32>
    %c1_i32 = arith.constant 1 : i32
    %26 = vector.broadcast %c1_i32 : i32 to vector<3x16x16xi32>
    %27 = arith.addi %25, %26 : vector<3x16x16xi32>
    %28 = vector.shape_cast %6 : vector<16x16xi32> to vector<1x16x16xi32>
    %29 = vector.broadcast %28 : vector<1x16x16xi32> to vector<3x16x16xi32>
    %30 = arith.cmpi eq, %29, %27 : vector<3x16x16xi32>
    %31 = vector.shape_cast %30 : vector<3x16x16xi1> to vector<1x3x16x16xi1>
    %cst_17 = arith.constant 0.000000e+00 : f32
    %32 = vector.shape_cast %31 : vector<1x3x16x16xi1> to vector<1x3x16x16xi1>
    %33 = vector.broadcast %32 : vector<1x3x16x16xi1> to vector<4x3x16x16xi1>
    %34 = vector.broadcast %cst_17 : f32 to vector<4x3x16x16xf32>
    %35 = arith.select %33, %24, %34 : vector<4x3x16x16xi1>, vector<4x3x16x16xf32>
    %cst_18 = arith.constant dense<0.000000e+00> : vector<4x16x16xf32>
    %36 = vector.multi_reduction <add>, %35, %cst_18 [1] : vector<4x3x16x16xf32> to vector<4x16x16xf32>
    %37 = vector.shape_cast %6 : vector<16x16xi32> to vector<1x16x16xi32>
    %c0_i32 = arith.constant 0 : i32
    %38 = vector.broadcast %c0_i32 : i32 to vector<1x16x16xi32>
    %39 = arith.cmpi sgt, %37, %38 : vector<1x16x16xi32>
    %cst_19 = arith.constant -1.000000e+30 : f32
    %40 = vector.shape_cast %39 : vector<1x16x16xi1> to vector<1x16x16xi1>
    %41 = vector.broadcast %40 : vector<1x16x16xi1> to vector<4x16x16xi1>
    %42 = vector.broadcast %cst_19 : f32 to vector<4x16x16xf32>
    %43 = arith.select %41, %36, %42 : vector<4x16x16xi1>, vector<4x16x16xf32>
    %cst_20 = arith.constant dense<0xFF800000> : vector<4x16xf32>
    %44 = vector.multi_reduction <maximumf>, %43, %cst_20 [2] : vector<4x16x16xf32> to vector<4x16xf32>
    %45 = vector.shape_cast %44 : vector<4x16xf32> to vector<4x16x1xf32>
    %46 = vector.broadcast %45 : vector<4x16x1xf32> to vector<4x16x16xf32>
    %47 = arith.subf %43, %46 : vector<4x16x16xf32>
    %48 = math.exp %47 : vector<4x16x16xf32>
    %cst_21 = arith.constant dense<0.000000e+00> : vector<4x16xf32>
    %49 = vector.multi_reduction <add>, %48, %cst_21 [2] : vector<4x16x16xf32> to vector<4x16xf32>
    %50 = vector.shape_cast %49 : vector<4x16xf32> to vector<4x16x1xf32>
    %51 = vector.broadcast %50 : vector<4x16x1xf32> to vector<4x16x16xf32>
    %52 = arith.divf %48, %51 : vector<4x16x16xf32>
    %53 = vector.extract_strided_slice %3 {offsets = [0, 0], sizes = [16, 32], strides = [1, 1]} : vector<32x32xf32> to vector<16x32xf32>
    %54 = vector.extract_strided_slice %52 {offsets = [0, 0, 0], sizes = [1, 16, 16], strides = [1, 1, 1]} : vector<4x16x16xf32> to vector<1x16x16xf32>
    %55 = vector.shape_cast %54 : vector<1x16x16xf32> to vector<16x16xf32>
    %56 = vector.extract_strided_slice %53 {offsets = [0, 0], sizes = [16, 8], strides = [1, 1]} : vector<16x32xf32> to vector<16x8xf32>
    %cst_22 = arith.constant dense<0.000000e+00> : vector<16x8xf32>
    %57 = tpu.matmul %55, %56, %cst_22 {dimension_numbers = #tpu.dot_dimension_numbers<[0], [0], [1], [1], [0, 1, 1, 1], [], []>} : vector<16x16xf32>, vector<16x8xf32>, vector<16x8xf32> -> vector<16x8xf32>
    %cst_23 = arith.constant 0.000000e+00 : f32
    %58 = vector.broadcast %cst_23 : f32 to vector<16x8xf32>
    %59 = arith.maximumf %57, %58 : vector<16x8xf32>
    %c0_24 = arith.constant 0 : index
    %c0_25 = arith.constant 0 : index
    %c0_26 = arith.constant 0 : index
    %60 = vector.load %arg6[%c0_24, %c0_25, %c0_26] : memref<2x16x32xf32, #tpu.memory_space<vmem>>, vector<1x16x8xf32>
    %61 = vector.shape_cast %60 : vector<1x16x8xf32> to vector<16x8xf32>
    %62 = vector.shape_cast %59 : vector<16x8xf32> to vector<1x16x8xf32>
    tpu.vector_store %arg6[%c0_24, %c0_25, %c0_26], %62 {strides = array<i32>} : memref<2x16x32xf32, #tpu.memory_space<vmem>>, vector<1x16x8xf32>,
    %63 = vector.extract_strided_slice %52 {offsets = [1, 0, 0], sizes = [1, 16, 16], strides = [1, 1, 1]} : vector<4x16x16xf32> to vector<1x16x16xf32>
    %64 = vector.shape_cast %63 : vector<1x16x16xf32> to vector<16x16xf32>
    %65 = vector.extract_strided_slice %53 {offsets = [0, 8], sizes = [16, 8], strides = [1, 1]} : vector<16x32xf32> to vector<16x8xf32>
    %cst_27 = arith.constant dense<0.000000e+00> : vector<16x8xf32>
    %66 = tpu.matmul %64, %65, %cst_27 {dimension_numbers = #tpu.dot_dimension_numbers<[0], [0], [1], [1], [0, 1, 1, 1], [], []>} : vector<16x16xf32>, vector<16x8xf32>, vector<16x8xf32> -> vector<16x8xf32>
    %cst_28 = arith.constant 0.000000e+00 : f32
    %67 = vector.broadcast %cst_28 : f32 to vector<16x8xf32>
    %68 = arith.maximumf %66, %67 : vector<16x8xf32>
    %c0_29 = arith.constant 0 : index
    %c0_30 = arith.constant 0 : index
    %c8 = arith.constant 8 : index
    %69 = vector.load %arg6[%c0_29, %c0_30, %c8] : memref<2x16x32xf32, #tpu.memory_space<vmem>>, vector<1x16x8xf32>
    %70 = vector.shape_cast %69 : vector<1x16x8xf32> to vector<16x8xf32>
    %71 = vector.shape_cast %68 : vector<16x8xf32> to vector<1x16x8xf32>
    tpu.vector_store %arg6[%c0_29, %c0_30, %c8], %71 {strides = array<i32>} : memref<2x16x32xf32, #tpu.memory_space<vmem>>, vector<1x16x8xf32>,
    %72 = vector.extract_strided_slice %52 {offsets = [2, 0, 0], sizes = [1, 16, 16], strides = [1, 1, 1]} : vector<4x16x16xf32> to vector<1x16x16xf32>
    %73 = vector.shape_cast %72 : vector<1x16x16xf32> to vector<16x16xf32>
    %74 = vector.extract_strided_slice %53 {offsets = [0, 16], sizes = [16, 8], strides = [1, 1]} : vector<16x32xf32> to vector<16x8xf32>
    %cst_31 = arith.constant dense<0.000000e+00> : vector<16x8xf32>
    %75 = tpu.matmul %73, %74, %cst_31 {dimension_numbers = #tpu.dot_dimension_numbers<[0], [0], [1], [1], [0, 1, 1, 1], [], []>} : vector<16x16xf32>, vector<16x8xf32>, vector<16x8xf32> -> vector<16x8xf32>
    %cst_32 = arith.constant 0.000000e+00 : f32
    %76 = vector.broadcast %cst_32 : f32 to vector<16x8xf32>
    %77 = arith.maximumf %75, %76 : vector<16x8xf32>
    %c0_33 = arith.constant 0 : index
    %c0_34 = arith.constant 0 : index
    %c16 = arith.constant 16 : index
    %78 = vector.load %arg6[%c0_33, %c0_34, %c16] : memref<2x16x32xf32, #tpu.memory_space<vmem>>, vector<1x16x8xf32>
    %79 = vector.shape_cast %78 : vector<1x16x8xf32> to vector<16x8xf32>
    %80 = vector.shape_cast %77 : vector<16x8xf32> to vector<1x16x8xf32>
    tpu.vector_store %arg6[%c0_33, %c0_34, %c16], %80 {strides = array<i32>} : memref<2x16x32xf32, #tpu.memory_space<vmem>>, vector<1x16x8xf32>,
    %81 = vector.extract_strided_slice %52 {offsets = [3, 0, 0], sizes = [1, 16, 16], strides = [1, 1, 1]} : vector<4x16x16xf32> to vector<1x16x16xf32>
    %82 = vector.shape_cast %81 : vector<1x16x16xf32> to vector<16x16xf32>
    %83 = vector.extract_strided_slice %53 {offsets = [0, 24], sizes = [16, 8], strides = [1, 1]} : vector<16x32xf32> to vector<16x8xf32>
    %cst_35 = arith.constant dense<0.000000e+00> : vector<16x8xf32>
    %84 = tpu.matmul %82, %83, %cst_35 {dimension_numbers = #tpu.dot_dimension_numbers<[0], [0], [1], [1], [0, 1, 1, 1], [], []>} : vector<16x16xf32>, vector<16x8xf32>, vector<16x8xf32> -> vector<16x8xf32>
    %cst_36 = arith.constant 0.000000e+00 : f32
    %85 = vector.broadcast %cst_36 : f32 to vector<16x8xf32>
    %86 = arith.maximumf %84, %85 : vector<16x8xf32>
    %c0_37 = arith.constant 0 : index
    %c0_38 = arith.constant 0 : index
    %c24 = arith.constant 24 : index
    %87 = vector.load %arg6[%c0_37, %c0_38, %c24] : memref<2x16x32xf32, #tpu.memory_space<vmem>>, vector<1x16x8xf32>
    %88 = vector.shape_cast %87 : vector<1x16x8xf32> to vector<16x8xf32>
    %89 = vector.shape_cast %86 : vector<16x8xf32> to vector<1x16x8xf32>
    tpu.vector_store %arg6[%c0_37, %c0_38, %c24], %89 {strides = array<i32>} : memref<2x16x32xf32, #tpu.memory_space<vmem>>, vector<1x16x8xf32>,
    %c1 = arith.constant 1 : index
    %c0_39 = arith.constant 0 : index
    %c0_40 = arith.constant 0 : index
    %90 = vector.load %arg2[%c1, %c0_39, %c0_40] : memref<2x16x16xi8, #tpu.memory_space<vmem>>, vector<1x16x16xi8>
    %91 = vector.shape_cast %90 : vector<1x16x16xi8> to vector<16x16xi8>
    %92 = arith.extsi %91 : vector<16x16xi8> to vector<16x16xi32>
    %93 = vector.extract_strided_slice %1 {offsets = [16, 0], sizes = [16, 32], strides = [1, 1]} : vector<32x32xf32> to vector<16x32xf32>
    %c1_41 = arith.constant 1 : index
    %c0_42 = arith.constant 0 : index
    %c0_43 = arith.constant 0 : index
    %94 = vector.load %arg4[%c1_41, %c0_42, %c0_43] : memref<2x32x12xf32, #tpu.memory_space<vmem>>, vector<1x32x12xf32>
    %95 = vector.shape_cast %94 : vector<1x32x12xf32> to vector<32x12xf32>
    %cst_44 = arith.constant dense<0.000000e+00> : vector<12x16xf32>
    %96 = tpu.matmul %95, %93, %cst_44 {dimension_numbers = #tpu.dot_dimension_numbers<[0], [1], [1], [0], [0, 1, 1, 0], [], []>} : vector<32x12xf32>, vector<16x32xf32>, vector<12x16xf32> -> vector<12x16xf32>
    %c1_45 = arith.constant 1 : index
    %c0_46 = arith.constant 0 : index
    %c0_47 = arith.constant 0 : index
    %97 = vector.load %arg5[%c1_45, %c0_46, %c0_47] : memref<2x32x12xf32, #tpu.memory_space<vmem>>, vector<1x32x12xf32>
    %98 = vector.shape_cast %97 : vector<1x32x12xf32> to vector<32x12xf32>
    %cst_48 = arith.constant dense<0.000000e+00> : vector<12x16xf32>
    %99 = tpu.matmul %98, %93, %cst_48 {dimension_numbers = #tpu.dot_dimension_numbers<[0], [1], [1], [0], [0, 1, 1, 0], [], []>} : vector<32x12xf32>, vector<16x32xf32>, vector<12x16xf32> -> vector<12x16xf32>
    %100 = vector.shape_cast %96 : vector<12x16xf32> to vector<12x16x1xf32>
    %101 = vector.shape_cast %99 : vector<12x16xf32> to vector<12x1x16xf32>
    %102 = vector.broadcast %100 : vector<12x16x1xf32> to vector<12x16x16xf32>
    %103 = vector.broadcast %101 : vector<12x1x16xf32> to vector<12x16x16xf32>
    %104 = arith.addf %102, %103 : vector<12x16x16xf32>
    %cst_49 = arith.constant 0.000000e+00 : f32
    %105 = vector.broadcast %cst_49 : f32 to vector<12x16x16xf32>
    %106 = arith.cmpf ogt, %104, %105 : vector<12x16x16xf32>
    %cst_50 = arith.constant 2.000000e-01 : f32
    %107 = vector.broadcast %cst_50 : f32 to vector<12x16x16xf32>
    %108 = arith.mulf %107, %104 : vector<12x16x16xf32>
    %109 = arith.select %106, %104, %108 : vector<12x16x16xi1>, vector<12x16x16xf32>
    %110 = vector.shape_cast %109 : vector<12x16x16xf32> to vector<4x3x16x16xf32>
    %111 = tpu.iota {dimensions = array<i32: 0>} : vector<3x16x16xi32>
    %c1_i32_51 = arith.constant 1 : i32
    %112 = vector.broadcast %c1_i32_51 : i32 to vector<3x16x16xi32>
    %113 = arith.addi %111, %112 : vector<3x16x16xi32>
    %114 = vector.shape_cast %92 : vector<16x16xi32> to vector<1x16x16xi32>
    %115 = vector.broadcast %114 : vector<1x16x16xi32> to vector<3x16x16xi32>
    %116 = arith.cmpi eq, %115, %113 : vector<3x16x16xi32>
    %117 = vector.shape_cast %116 : vector<3x16x16xi1> to vector<1x3x16x16xi1>
    %cst_52 = arith.constant 0.000000e+00 : f32
    %118 = vector.shape_cast %117 : vector<1x3x16x16xi1> to vector<1x3x16x16xi1>
    %119 = vector.broadcast %118 : vector<1x3x16x16xi1> to vector<4x3x16x16xi1>
    %120 = vector.broadcast %cst_52 : f32 to vector<4x3x16x16xf32>
    %121 = arith.select %119, %110, %120 : vector<4x3x16x16xi1>, vector<4x3x16x16xf32>
    %cst_53 = arith.constant dense<0.000000e+00> : vector<4x16x16xf32>
    %122 = vector.multi_reduction <add>, %121, %cst_53 [1] : vector<4x3x16x16xf32> to vector<4x16x16xf32>
    %123 = vector.shape_cast %92 : vector<16x16xi32> to vector<1x16x16xi32>
    %c0_i32_54 = arith.constant 0 : i32
    %124 = vector.broadcast %c0_i32_54 : i32 to vector<1x16x16xi32>
    %125 = arith.cmpi sgt, %123, %124 : vector<1x16x16xi32>
    %cst_55 = arith.constant -1.000000e+30 : f32
    %126 = vector.shape_cast %125 : vector<1x16x16xi1> to vector<1x16x16xi1>
    %127 = vector.broadcast %126 : vector<1x16x16xi1> to vector<4x16x16xi1>
    %128 = vector.broadcast %cst_55 : f32 to vector<4x16x16xf32>
    %129 = arith.select %127, %122, %128 : vector<4x16x16xi1>, vector<4x16x16xf32>
    %cst_56 = arith.constant dense<0xFF800000> : vector<4x16xf32>
    %130 = vector.multi_reduction <maximumf>, %129, %cst_56 [2] : vector<4x16x16xf32> to vector<4x16xf32>
    %131 = vector.shape_cast %130 : vector<4x16xf32> to vector<4x16x1xf32>
    %132 = vector.broadcast %131 : vector<4x16x1xf32> to vector<4x16x16xf32>
    %133 = arith.subf %129, %132 : vector<4x16x16xf32>
    %134 = math.exp %133 : vector<4x16x16xf32>
    %cst_57 = arith.constant dense<0.000000e+00> : vector<4x16xf32>
    %135 = vector.multi_reduction <add>, %134, %cst_57 [2] : vector<4x16x16xf32> to vector<4x16xf32>
    %136 = vector.shape_cast %135 : vector<4x16xf32> to vector<4x16x1xf32>
    %137 = vector.broadcast %136 : vector<4x16x1xf32> to vector<4x16x16xf32>
    %138 = arith.divf %134, %137 : vector<4x16x16xf32>
    %139 = vector.extract_strided_slice %3 {offsets = [16, 0], sizes = [16, 32], strides = [1, 1]} : vector<32x32xf32> to vector<16x32xf32>
    %140 = vector.extract_strided_slice %138 {offsets = [0, 0, 0], sizes = [1, 16, 16], strides = [1, 1, 1]} : vector<4x16x16xf32> to vector<1x16x16xf32>
    %141 = vector.shape_cast %140 : vector<1x16x16xf32> to vector<16x16xf32>
    %142 = vector.extract_strided_slice %139 {offsets = [0, 0], sizes = [16, 8], strides = [1, 1]} : vector<16x32xf32> to vector<16x8xf32>
    %cst_58 = arith.constant dense<0.000000e+00> : vector<16x8xf32>
    %143 = tpu.matmul %141, %142, %cst_58 {dimension_numbers = #tpu.dot_dimension_numbers<[0], [0], [1], [1], [0, 1, 1, 1], [], []>} : vector<16x16xf32>, vector<16x8xf32>, vector<16x8xf32> -> vector<16x8xf32>
    %cst_59 = arith.constant 0.000000e+00 : f32
    %144 = vector.broadcast %cst_59 : f32 to vector<16x8xf32>
    %145 = arith.maximumf %143, %144 : vector<16x8xf32>
    %c1_60 = arith.constant 1 : index
    %c0_61 = arith.constant 0 : index
    %c0_62 = arith.constant 0 : index
    %146 = vector.load %arg6[%c1_60, %c0_61, %c0_62] : memref<2x16x32xf32, #tpu.memory_space<vmem>>, vector<1x16x8xf32>
    %147 = vector.shape_cast %146 : vector<1x16x8xf32> to vector<16x8xf32>
    %148 = vector.shape_cast %145 : vector<16x8xf32> to vector<1x16x8xf32>
    tpu.vector_store %arg6[%c1_60, %c0_61, %c0_62], %148 {strides = array<i32>} : memref<2x16x32xf32, #tpu.memory_space<vmem>>, vector<1x16x8xf32>,
    %149 = vector.extract_strided_slice %138 {offsets = [1, 0, 0], sizes = [1, 16, 16], strides = [1, 1, 1]} : vector<4x16x16xf32> to vector<1x16x16xf32>
    %150 = vector.shape_cast %149 : vector<1x16x16xf32> to vector<16x16xf32>
    %151 = vector.extract_strided_slice %139 {offsets = [0, 8], sizes = [16, 8], strides = [1, 1]} : vector<16x32xf32> to vector<16x8xf32>
    %cst_63 = arith.constant dense<0.000000e+00> : vector<16x8xf32>
    %152 = tpu.matmul %150, %151, %cst_63 {dimension_numbers = #tpu.dot_dimension_numbers<[0], [0], [1], [1], [0, 1, 1, 1], [], []>} : vector<16x16xf32>, vector<16x8xf32>, vector<16x8xf32> -> vector<16x8xf32>
    %cst_64 = arith.constant 0.000000e+00 : f32
    %153 = vector.broadcast %cst_64 : f32 to vector<16x8xf32>
    %154 = arith.maximumf %152, %153 : vector<16x8xf32>
    %c1_65 = arith.constant 1 : index
    %c0_66 = arith.constant 0 : index
    %c8_67 = arith.constant 8 : index
    %155 = vector.load %arg6[%c1_65, %c0_66, %c8_67] : memref<2x16x32xf32, #tpu.memory_space<vmem>>, vector<1x16x8xf32>
    %156 = vector.shape_cast %155 : vector<1x16x8xf32> to vector<16x8xf32>
    %157 = vector.shape_cast %154 : vector<16x8xf32> to vector<1x16x8xf32>
    tpu.vector_store %arg6[%c1_65, %c0_66, %c8_67], %157 {strides = array<i32>} : memref<2x16x32xf32, #tpu.memory_space<vmem>>, vector<1x16x8xf32>,
    %158 = vector.extract_strided_slice %138 {offsets = [2, 0, 0], sizes = [1, 16, 16], strides = [1, 1, 1]} : vector<4x16x16xf32> to vector<1x16x16xf32>
    %159 = vector.shape_cast %158 : vector<1x16x16xf32> to vector<16x16xf32>
    %160 = vector.extract_strided_slice %139 {offsets = [0, 16], sizes = [16, 8], strides = [1, 1]} : vector<16x32xf32> to vector<16x8xf32>
    %cst_68 = arith.constant dense<0.000000e+00> : vector<16x8xf32>
    %161 = tpu.matmul %159, %160, %cst_68 {dimension_numbers = #tpu.dot_dimension_numbers<[0], [0], [1], [1], [0, 1, 1, 1], [], []>} : vector<16x16xf32>, vector<16x8xf32>, vector<16x8xf32> -> vector<16x8xf32>
    %cst_69 = arith.constant 0.000000e+00 : f32
    %162 = vector.broadcast %cst_69 : f32 to vector<16x8xf32>
    %163 = arith.maximumf %161, %162 : vector<16x8xf32>
    %c1_70 = arith.constant 1 : index
    %c0_71 = arith.constant 0 : index
    %c16_72 = arith.constant 16 : index
    %164 = vector.load %arg6[%c1_70, %c0_71, %c16_72] : memref<2x16x32xf32, #tpu.memory_space<vmem>>, vector<1x16x8xf32>
    %165 = vector.shape_cast %164 : vector<1x16x8xf32> to vector<16x8xf32>
    %166 = vector.shape_cast %163 : vector<16x8xf32> to vector<1x16x8xf32>
    tpu.vector_store %arg6[%c1_70, %c0_71, %c16_72], %166 {strides = array<i32>} : memref<2x16x32xf32, #tpu.memory_space<vmem>>, vector<1x16x8xf32>,
    %167 = vector.extract_strided_slice %138 {offsets = [3, 0, 0], sizes = [1, 16, 16], strides = [1, 1, 1]} : vector<4x16x16xf32> to vector<1x16x16xf32>
    %168 = vector.shape_cast %167 : vector<1x16x16xf32> to vector<16x16xf32>
    %169 = vector.extract_strided_slice %139 {offsets = [0, 24], sizes = [16, 8], strides = [1, 1]} : vector<16x32xf32> to vector<16x8xf32>
    %cst_73 = arith.constant dense<0.000000e+00> : vector<16x8xf32>
    %170 = tpu.matmul %168, %169, %cst_73 {dimension_numbers = #tpu.dot_dimension_numbers<[0], [0], [1], [1], [0, 1, 1, 1], [], []>} : vector<16x16xf32>, vector<16x8xf32>, vector<16x8xf32> -> vector<16x8xf32>
    %cst_74 = arith.constant 0.000000e+00 : f32
    %171 = vector.broadcast %cst_74 : f32 to vector<16x8xf32>
    %172 = arith.maximumf %170, %171 : vector<16x8xf32>
    %c1_75 = arith.constant 1 : index
    %c0_76 = arith.constant 0 : index
    %c24_77 = arith.constant 24 : index
    %173 = vector.load %arg6[%c1_75, %c0_76, %c24_77] : memref<2x16x32xf32, #tpu.memory_space<vmem>>, vector<1x16x8xf32>
    %174 = vector.shape_cast %173 : vector<1x16x8xf32> to vector<16x8xf32>
    %175 = vector.shape_cast %172 : vector<16x8xf32> to vector<1x16x8xf32>
    tpu.vector_store %arg6[%c1_75, %c0_76, %c24_77], %175 {strides = array<i32>} : memref<2x16x32xf32, #tpu.memory_space<vmem>>, vector<1x16x8xf32>,
    return
  }
  func.func @transform_0(%arg0: i32) -> (i32, i32, i32) {
    %c0_i32 = arith.constant 0 : i32
    %c0_i32_0 = arith.constant 0 : i32
    %c0_i32_1 = arith.constant 0 : i32
    return %arg0, %c0_i32, %c0_i32_0 : i32, i32, i32
  }
  func.func @transform_1(%arg0: i32) -> (i32, i32, i32) {
    %c0_i32 = arith.constant 0 : i32
    %c0_i32_0 = arith.constant 0 : i32
    %c0_i32_1 = arith.constant 0 : i32
    return %arg0, %c0_i32, %c0_i32_0 : i32, i32, i32
  }
  func.func @transform_2(%arg0: i32) -> (i32, i32) {
    %c0_i32 = arith.constant 0 : i32
    %c0_i32_0 = arith.constant 0 : i32
    %c0_i32_1 = arith.constant 0 : i32
    return %c0_i32, %c0_i32_0 : i32, i32
  }
  func.func @transform_3(%arg0: i32) -> (i32, i32, i32) {
    %c0_i32 = arith.constant 0 : i32
    %c0_i32_0 = arith.constant 0 : i32
    %c0_i32_1 = arith.constant 0 : i32
    return %arg0, %c0_i32, %c0_i32_0 : i32, i32, i32
  }
  func.func @transform_4(%arg0: i32) -> (i32, i32, i32) {
    %c0_i32 = arith.constant 0 : i32
    %c0_i32_0 = arith.constant 0 : i32
    %c0_i32_1 = arith.constant 0 : i32
    return %arg0, %c0_i32, %c0_i32_0 : i32, i32, i32
  }
  func.func @transform_5(%arg0: i32) -> (i32, i32, i32) {
    %c0_i32 = arith.constant 0 : i32
    %c0_i32_0 = arith.constant 0 : i32
    %c0_i32_1 = arith.constant 0 : i32
    return %arg0, %c0_i32, %c0_i32_0 : i32, i32, i32
  }
}

</mosaic_0001>

<bundles_post_ra>
// kernel: tpu_custom_call.1
= control target key start
LH: loop header
LB: loop body
LE: loop exit
PB: predicated region body
PF: predicated region fallthrough
CT: control target
= control target key end

     0   :  { %vm29_vm0 = vcmask 261120   ;;  %s3904_s0 = inlined_call_operand.vmem [shape: f32[2,16,32], index: 0, kind: input, shape index: {}]   ;;  %s3905_s1 = inlined_call_operand.vmem [shape: s8[2,16,16], index: 1, kind: input, shape index: {}]   ;;  %s3906_s2 = inlined_call_operand.vmem [shape: f32[32,32], index: 2, kind: input, shape index: {}]   ;;  %s3907_s3 = inlined_call_operand.vmem [shape: f32[2,32,12], index: 3, kind: input, shape index: {}]   ;;  %s3908_s4 = inlined_call_operand.vmem [shape: f32[2,32,12], index: 4, kind: input, shape index: {}]   ;;  %s3909_s5 = inlined_call_operand.hbm [shape: f32[2,16,32], index: 5, kind: output, shape index: {}]  }
   0x1   :  { %v131_v0 = vld [vmem:[%s3907_s3] sm:$0xff]  ;;  %v132_v2 = vld [vmem:[%s3907_s3 + $0x8] sm:$0xff]  ;;  %vm3206_vm1 = vmpackc.low %vm29_vm0, %vm29_vm0 }
   0x2   :  { %135 = vxpose.xlu0.b32.start [1/4] (short) (narrow) %v131_v0, 16  ;;  %v248_v1 = vld [vmem:[%s3908_s4] sm:$0xff]  ;;  %v249_v4 = vld [vmem:[%s3908_s4 + $0x8] sm:$0xff] }
   0x3   :  { %252 = vxpose.xlu1.b32.start [1/4] (short) (narrow) %v248_v1, 16  ;;  %v21_v3 = vld [vmem:[%s3904_s0] sm:$0xff]  ;;  %v22_v5 = vld [vmem:[%s3904_s0 + $0x8] sm:$0xff] }
   0x4   :  { %2864 = vmatprep.mubr.msk.f32.mxu0 %vm29_vm0, %v21_v3  ;;  %v2962_v7 = vpack.c.bf16 %v22_v5, %v21_v3 }
   0x5   :  { %10 = vsyncpa [#allocation3], 0  ;;  %v133_v8 = vld [vmem:[%s3907_s3 + $0x10] sm:$0xff]  ;;  %v25_v10 = vld [vmem:[%s3906_s2] sm:$0xff]  ;;  %v365_v30 = vlaneseq  ;;  %v3147_v59 = vmov 1966171168  }
   0x6   :  { %136 = vxpose.xlu0.b32.cont [2/4] (short) (narrow) %v132_v2, 16  ;;  %v250_v9 = vld [vmem:[%s3908_s4 + $0x10] sm:$0xff]  ;;  %2964 = vmatprep.subr.msk.bf16.mxu1 %vm3206_vm1, %v2962_v7  ;;  %v26_v11 = vld [vmem:[%s3906_s2 + $0x8] sm:$0xff]  ;;  %v28_v14 = vld [vmem:[%s3906_s2 + $0x18] sm:$0xff]  ;;  %v501_v60 = vunpack.c.l.s4 %v3147_v59  ;;  %vm770_vm6 = vcmask 130048   ;;  %s3148_s25 = smov 112  }
   0x7   :  { %253 = vxpose.xlu1.b32.cont [2/4] (short) (narrow) %v249_v4, 16  ;;  %v27_v12 = vld [vmem:[%s3906_s2 + $0x10] sm:$0xff]  ;;  %2967 = vmatpush3.bf16.xpose.msk.msra.mxu1 %vm3206_vm1, %v2962_v7  ;;  %v2954_v13 = vpack.c.bf16 %v26_v11, %v25_v10  ;;  %v24_v16 = vld [vmem:[%s3904_s0 + $0x18] sm:$0xff]  ;;  %v3260_v31 = vshrl.u32 %v365_v30, 7  ;;  %s3149_s9 = smov 104   ;;  %s3150_s17 = smov 120  }
   0x8   :  { %v23_v15 = vld [vmem:[%s3904_s0 + $0x10] sm:$0xff]  ;;  %v2958_v17 = vpack.c.bf16 %v28_v14, %v27_v12  ;;  %v134_v19 = vld [vmem:[%s3907_s3 + $0x18] sm:$0xff]  ;;  %v502_v61 = vunpack.c.0.s8 %v501_v60  ;;  %s3152_s19 = smov 16   ;;  %s3153_s20 = smov 24  }
   0x9   :  { %v3239_v18 = vpack.c.bf16 %v24_v16, %v23_v15  ;;  %2955 = vmatprep.subr.bf16.mxu0 %v2954_v13  ;;  %v251_v20 = vld [vmem:[%s3908_s4 + $0x18] sm:$0xff]  ;;  %v444_v32 = vsub.s32 7, %v3260_v31  ;;  %v433_v33 = vsub.s32 6, %v3260_v31  ;;  %v3265_v37 = vsub.s32 0, %v3260_v31  ;;  %s3154_s21 = smov [#allocation2]  }
   0xa   :  { %137 = vxpose.xlu0.b32.cont [3/4] (short) (narrow) %v133_v8, 16  ;;  %2957 = vmatpush3.bf16.msra.mxu0 %v2954_v13  ;;  %v3273_v43 = vsub.s32 1, %v3260_v31  ;;  %v3281_v47 = vsub.s32 2, %v3260_v31  ;;  %v411_v50 = vsub.s32 4, %v3260_v31  ;;  %v3289_v52 = vsub.s32 3, %v3260_v31  ;;  %s2735_s22 = sshll.u32 %s3154_s21, 4  ;;  %s2736_s22 = int_to_ptr.vmem [resolvable:$true] %s2735_s22 }
   0xb   :  { %254 = vxpose.xlu1.b32.cont [3/4] (short) (narrow) %v250_v9, 16  ;;  %2959 = vmatprep.subr.bf16.mxu0 %v2958_v17  ;;  %v422_v55 = vsub.s32 5, %v3260_v31  ;;  %v3299_v62 = vsub.s32 %v502_v61, %v3260_v31  ;;  %v2793_v9 = vld [vmem:[%s3905_s1] sm:$0xf]   ;;  %s3123_s2 = scalar_lea.vmem %s2736_s22, 512  ;;  %p3128_p1 = scmp.lt.s32.totalorder %s2736_s22, %s2736_s22 }
   0xc   :  { %v3318_v13 = vunpack.c.0.s8 %v2793_v9  ;;  %p3124_p0 = scmp.ne.s32.totalorder %s2736_s22, %s3123_s2  ;;  %p3129_p2 = scmp.lt.s32.totalorder %s3123_s2, %s3123_s2 }
   0xe   :  { %138 = vxpose.xlu0.b32.end [4/4] (short) (narrow) %v134_v19, 16  ;;  %2961 = vmatpush3.bf16.msra.mxu0 %v2958_v17  ;;  %vm730_vm2 = vcmp.eq.s32.totalorder %v3318_v13, 2  ;;  %vm728_vm3 = vcmp.eq.s32.totalorder %v3318_v13, 1  ;;  %vm732_vm12 = vcmp.eq.s32.totalorder %v3318_v13, 3  ;;  %vm811_vm15 = vcmp.gt.s32.totalorder %v3318_v13, 0  ;;  %p3130_p3 = por %p3129_p2, %p3128_p1 }
   0xf   :  { %255 = vxpose.xlu1.b32.end [4/4] (short) (narrow) %v251_v20, 16  ;;  %2970 = vmatprep.subr.msk.bf16.mxu0 %vm3206_vm1, %v2962_v7 }
  0x10   :  { %p3131_p4 = pnand %p3130_p3, %p3124_p0 }
  0x11   :  { %2865 = vmatmul.mubr.msk.f32.vlgmr.msra.gmra.mrb[0].mxu0 %vm29_vm0, %v22_v5 }
  0x12   :  { %2867 = vmatprep.mubr.msk.f32.mxu0 %vm29_vm0, %v23_v15 }
  0x15   :  { %2868 = vmatmul.mubr.msk.f32.gmra.mrb[2].mxu0 %vm29_vm0, %v24_v16 }
  0x17   :  { %2973 = vmatpush3.bf16.xpose.msk.msra.mxu0 %vm3206_vm1, %v2962_v7 }
  0x82   :  { %v151_v21 = vpop.trf.xlu0 }
  0x83   :  { %2874 = vmatprep.mubr.msk.f32.mxu1 %vm29_vm0, %v151_v21  ;;  %v268_v22 = vpop.trf.xlu1 }
  0x84   :  { %2881 = vmatprep.mubr.msk.f32.mxu0 %vm29_vm0, %v268_v22  ;;  %v3323_v22 = vunpack.c.1.s8 %v2793_v9 }
  0x86   :  { %v152_v23 = vpop.trf.xlu0  ;;  %vm729_vm7 = vcmp.eq.s32.totalorder %v3323_v22, 1  ;;  %vm731_vm8 = vcmp.eq.s32.totalorder %v3323_v22, 2  ;;  %vm733_vm9 = vcmp.eq.s32.totalorder %v3323_v22, 3  ;;  %vm812_vm14 = vcmp.gt.s32.totalorder %v3323_v22, 0 }
  0x87   :  { %2875 = vmatmul.mubr.msk.f32.vlgmr.msra.gmra.mrb[0].mxu1 %vm29_vm0, %v152_v23  ;;  %v269_v24 = vpop.trf.xlu1 }
  0x88   :  { %2882 = vmatmul.mubr.msk.f32.vlgmr.msra.gmra.mrb[4].mxu0 %vm29_vm0, %v269_v24 }
  0xe4   :  { %v2866_v25 = vpop.f32.mrb[0].mxu0 }
  0xe5   :  { %v108_v26 = vpop.f32.mrb[1].mxu0 }
  0xe6   :  { %v2974_v41 = vpack.c.bf16 %v2866_v25, %v108_v26  ;;  %v3275_v44 = vpack.i.bf16 %v2866_v25, %v108_v26 }
  0xe8   :  { %v2869_v27 = vpop.f32.mrb[2].mxu0  ;;  %2975 = vmatprep.subr.bf16.mxu1 %v2974_v41 }
  0xe9   :  { %v118_v28 = vpop.f32.mrb[3].mxu0  ;;  %2977 = vmatpush3.bf16.msra.mxu1 %v2974_v41 }
  0xea   :  { %v3258_v29 = vpack.i.bf16 %v2869_v27, %v118_v28  ;;  %v3278_v46 = vpack.c.bf16 %v2869_v27, %v118_v28 }
 0x15a   :  { %v2876_v34 = vpop.f32.mrb[0].mxu1 }
 0x15b   :  { %v239_v35 = vpop.f32.mrb[1].mxu1  ;;  %v2883_v36 = vpop.f32.mrb[4].mxu0  ;;  %v456_v42 = vrot.slane %v2876_v34, %v3265_v37  ;;  %v478_v53 = vrot.slane %v2876_v34, %v3281_v47  ;;  %v489_v57 = vrot.slane %v2876_v34, %v3289_v52  ;;  %v467_v58 = vrot.slane %v2876_v34, %v3273_v43 }
 0x15c   :  { %v445_v38 = vrot.slane %v239_v35, %v444_v32  ;;  %v434_v39 = vrot.slane %v239_v35, %v433_v33  ;;  %v356_v40 = vpop.f32.mrb[5].mxu0  ;;  %v379_v45 = vrot.slane %v239_v35, %v3273_v43  ;;  %v390_v48 = vrot.slane %v239_v35, %v3281_v47 }
 0x15d   :  { %v368_v49 = vrot.slane %v239_v35, %v3265_v37  ;;  %v412_v51 = vrot.slane %v239_v35, %v411_v50  ;;  %v401_v54 = vrot.slane %v239_v35, %v3289_v52  ;;  %v423_v56 = vrot.slane %v239_v35, %v422_v55 }
 0x15e   :  { %447 = vbcast.lane.b32.xlu1 %v445_v38, 256  ;;  %436 = vbcast.lane.b32.xlu0 %v434_v39, 256  ;;  %v499_v63 = vcombine.high %v356_v40, %v356_v40  ;;  %v554_v4 = vrot.slane %v2883_v36, %v3299_v62  ;;  %v506_v12 = vrot.slane %v356_v40, %v3299_v62 }
 0x160   :  { %v513_v0 = vrot.slane %v499_v63, %v3299_v62  ;;  %v3310_v8 = vrot.slane %v554_v4, %v3299_v62  ;;  %v514_v20 = vcombine.high %v506_v12, %v506_v12  ;;  %v522_v21 = vrot.slane %v506_v12, %v3299_v62 }
 0x161   :  { %v555_v23 = vcombine.high %v554_v4, %v554_v4 }
 0x162   :  { %440 = vbcast.lane.b32.xlu1 %v434_v39, 264  ;;  %462 = vbcast.lane.b32.xlu0 %v456_v42, 264  ;;  %v515_v1 = vcombine.high %v513_v0, %v513_v0  ;;  %v529_v2 = vrot.slane %v513_v0, %v3299_v62  ;;  %v607_v19 = vrot.slane %v3310_v8, %v3265_v37 }
 0x163   :  { %v3328_v34 = vrot.slane %v514_v20, %v3299_v62  ;;  %v544_v35 = vcombine.high %v522_v21, %v522_v21  ;;  %v570_v63 = vcombine.high %v3310_v8, %v3310_v8 }
 0x164   :  { %v3304_v3 = vrot.slane %v515_v1, %v3299_v62  ;;  %v545_v7 = vcombine.high %v529_v2, %v529_v2 }
 0x165   :  { %v546_v0 = vcombine.high %v3328_v34, %v3328_v34  ;;  %v3366_v20 = vrot.slane %v570_v63, %v3265_v37 }
 0x166   :  { %451 = vbcast.lane.b32.xlu1 %v445_v38, 264  ;;  %381 = vbcast.lane.b32.xlu0 %v379_v45, 256  ;;  %v547_v5 = vcombine.high %v3304_v3, %v3304_v3  ;;  %v599_v11 = vrot.slane %v545_v7, %v3265_v37  ;;  %v3334_v38 = vrot.slane %v555_v23, %v3299_v62 }
 0x168   :  { %v603_v10 = vrot.slane %v547_v5, %v3265_v37 }
 0x16a   :  { %458 = vbcast.lane.b32.xlu1 %v456_v42, 256  ;;  %385 = vbcast.lane.b32.xlu0 %v379_v45, 264  ;;  %v575_v42 = vrot.slane %v522_v21, %v3265_v37 }
 0x16e   :  { %396 = vbcast.lane.b32.xlu0 %v390_v48, 264  ;;  %370 = vbcast.lane.b32.xlu1 %v368_v49, 256 }
 0x172   :  { %414 = vbcast.lane.b32.xlu0 %v412_v51, 256  ;;  %374 = vbcast.lane.b32.xlu1 %v368_v49, 264 }
 0x176   :  { %418 = vbcast.lane.b32.xlu0 %v412_v51, 264  ;;  %392 = vbcast.lane.b32.xlu1 %v390_v48, 256  ;;  %v3338_v51 = vrot.slane %v529_v2, %v3265_v37 }
 0x17a   :  { %480 = vbcast.lane.b32.xlu0 %v478_v53, 256  ;;  %403 = vbcast.lane.b32.xlu1 %v401_v54, 256 }
 0x17e   :  { %429 = vbcast.lane.b32.xlu0 %v423_v56, 264  ;;  %407 = vbcast.lane.b32.xlu1 %v401_v54, 264  ;;  %v3343_v54 = vrot.slane %v544_v35, %v3265_v37 }
 0x182   :  { %484 = vbcast.lane.b32.xlu0 %v478_v53, 264  ;;  %425 = vbcast.lane.b32.xlu1 %v423_v56, 256  ;;  %v579_v53 = vrot.slane %v3328_v34, %v3265_v37 }
 0x186   :  { %495 = vbcast.lane.b32.xlu0 %v489_v57, 264  ;;  %469 = vbcast.lane.b32.xlu1 %v467_v58, 256 }
 0x18a   :  { %473 = vbcast.lane.b32.xlu1 %v467_v58, 264 }
 0x18e   :  { %491 = vbcast.lane.b32.xlu1 %v489_v57, 256 }
 0x1d0   :  { %v448_v14 = vpop.permute.xlu1 %447  ;;  %v437_v15 = vpop.permute.xlu0 %436 }
 0x1d1   :  { %v646_v16 = vadd.f32 %v603_v10, %v448_v14  ;;  %v644_v17 = vadd.f32 %v599_v11, %v437_v15 }
 0x1d3   :  { %v692_v24 = vmul.f32 0.2, %v644_v17  ;;  %v694_v27 = vmul.f32 0.2, %v646_v16  ;;  %vm668_vm4 = vcmp.gt.f32.partialorder %v644_v17, 0.0  ;;  %vm670_vm5 = vcmp.gt.f32.partialorder %v646_v16, 0.0 }
 0x1d4   :  { %v441_v25 = vpop.permute.xlu1 %440  ;;  %v463_v26 = vpop.permute.xlu0 %462 }
 0x1d5   :  { %v645_v28 = vadd.f32 %v599_v11, %v441_v25  ;;  %v649_v30 = vadd.f32 %v607_v19, %v463_v26  ;;  %v716_v39 = vsel %vm668_vm4, %v644_v17, %v692_v24  ;;  %v718_v45 = vsel %vm670_vm5, %v646_v16, %v694_v27 }
 0x1d6   :  { %v758_v56 = vsel %vm728_vm3, %v716_v39, 0.0  ;;  %v760_v59 = vsel %vm730_vm2, %v718_v45, 0.0 }
 0x1d7   :  { %v693_v36 = vmul.f32 0.2, %v645_v28  ;;  %vm669_vm10 = vcmp.gt.f32.partialorder %v645_v28, 0.0  ;;  %v697_v48 = vmul.f32 0.2, %v649_v30  ;;  %vm673_vm11 = vcmp.gt.f32.partialorder %v649_v30, 0.0 }
 0x1d8   :  { %v452_v40 = vpop.permute.xlu1 %451  ;;  %v382_v41 = vpop.permute.xlu0 %381  ;;  %v791_v11 = vsel %vm770_vm6, %v758_v56, 0.0  ;;  %v792_v14 = vsel %vm770_vm6, %v760_v59, 0.0  ;;  %v587_v56 = vrot.slane %v546_v0, %v3265_v37 }
 0x1d9   :  { %v647_v49 = vadd.f32 %v603_v10, %v452_v40  ;;  %v717_v57 = vsel %vm669_vm10, %v645_v28, %v693_v36  ;;  %v721_v1 = vsel %vm673_vm11, %v649_v30, %v697_v48  ;;  %v634_v10 = vadd.f32 %v579_v53, %v382_v41 }
 0x1da   :  { %v759_v7 = vsel %vm729_vm7, %v717_v57, 0.0  ;;  %v763_v17 = vsel %vm733_vm9, %v721_v1, 0.0  ;;  %v793_v30 = vadd.f32 %v792_v14, %v791_v11 }
 0x1db   :  { %vm671_vm13 = vcmp.gt.f32.partialorder %v647_v49, 0.0  ;;  %v695_v58 = vmul.f32 0.2, %v647_v49  ;;  %v796_v25 = vsel %vm770_vm6, %v759_v7, 0.0  ;;  %v682_v26 = vmul.f32 0.2, %v634_v10 }
 0x1dc   :  { %v459_v60 = vpop.permute.xlu1 %458  ;;  %v386_v61 = vpop.permute.xlu0 %385  ;;  %vm658_vm10 = vcmp.gt.f32.partialorder %v634_v10, 0.0  ;;  %v799_v36 = vsel %vm770_vm6, %v763_v17, 0.0 }
 0x1dd   :  { %v719_v2 = vsel %vm671_vm13, %v647_v49, %v695_v58  ;;  %v648_v4 = vadd.f32 %v607_v19, %v459_v60  ;;  %v635_v5 = vadd.f32 %v579_v53, %v386_v61  ;;  %v706_v57 = vsel %vm658_vm10, %v634_v10, %v682_v26 }
 0x1de   :  { %v761_v9 = vsel %vm731_vm8, %v719_v2, 0.0  ;;  %v571_v60 = vcombine.high %v3334_v38, %v3334_v38 }
 0x1df   :  { %vm672_vm4 = vcmp.gt.f32.partialorder %v648_v4, 0.0  ;;  %v696_v8 = vmul.f32 0.2, %v648_v4  ;;  %v683_v12 = vmul.f32 0.2, %v635_v5  ;;  %vm659_vm5 = vcmp.gt.f32.partialorder %v635_v5, 0.0 }
 0x1e0   :  { %v397_v15 = vpop.permute.xlu0 %396  ;;  %v371_v16 = vpop.permute.xlu1 %370  ;;  %v797_v19 = vsel %vm770_vm6, %v761_v9, 0.0 }
 0x1e1   :  { %v720_v21 = vsel %vm672_vm4, %v648_v4, %v696_v8  ;;  %v637_v23 = vadd.f32 %v3343_v54, %v397_v15  ;;  %v632_v24 = vadd.f32 %v575_v42, %v371_v16  ;;  %v798_v27 = vadd.f32 %v797_v19, %v796_v25 }
 0x1e2   :  { %v762_v28 = vsel %vm732_vm12, %v720_v21, 0.0  ;;  %v707_v34 = vsel %vm659_vm5, %v635_v5, %v683_v12  ;;  %v3400_v15 = vrot.slane %v3334_v38, %v3265_v37  ;;  %v748_v16 = vsel %vm730_vm2, %v706_v57, 0.0 }
 0x1e3   :  { %v680_v35 = vmul.f32 0.2, %v632_v24  ;;  %v685_v39 = vmul.f32 0.2, %v637_v23  ;;  %vm656_vm11 = vcmp.gt.f32.partialorder %v632_v24, 0.0  ;;  %v800_v45 = vadd.f32 %v799_v36, %v798_v27 }
 0x1e4   :  { %v415_v40 = vpop.permute.xlu0 %414  ;;  %v375_v41 = vpop.permute.xlu1 %374  ;;  %v794_v48 = vsel %vm770_vm6, %v762_v28, 0.0  ;;  %vm661_vm13 = vcmp.gt.f32.partialorder %v637_v23, 0.0  ;;  %v749_v61 = vsel %vm731_vm8, %v707_v34, 0.0  ;;  %v772_v34 = vsel %vm770_vm6, %v748_v16, 0.0 }
 0x1e5   :  { %v640_v49 = vadd.f32 %v3338_v51, %v415_v40  ;;  %v633_v53 = vadd.f32 %v575_v42, %v375_v41  ;;  %v3378_v58 = vsel %vm812_vm14, %v800_v45, -1e+30  ;;  %v795_v59 = vadd.f32 %v794_v48, %v793_v30 }
 0x1e6   :  { %v704_v63 = vsel %vm656_vm11, %v632_v24, %v680_v35  ;;  %v709_v2 = vsel %vm661_vm13, %v637_v23, %v685_v39  ;;  %v840_v42 = vsel %vm770_vm6, %v3378_v58, -inf  ;;  %v777_v38 = vsel %vm770_vm6, %v749_v61, 0.0 }
 0x1e7   :  { %vm657_vm4 = vcmp.gt.f32.partialorder %v633_v53, 0.0  ;;  %v681_v1 = vmul.f32 0.2, %v633_v53  ;;  %v688_v4 = vmul.f32 0.2, %v640_v49  ;;  %vm664_vm5 = vcmp.gt.f32.partialorder %v640_v49, 0.0  ;;  %841 = vmax.xlane.f32.xlu0 %v840_v42 }
 0x1e8   :  { %v419_v0 = vpop.permute.xlu0 %418  ;;  %v393_v5 = vpop.permute.xlu1 %392  ;;  %v3388_v7 = vsel %vm811_vm15, %v795_v59, -1e+30  ;;  %v746_v8 = vsel %vm728_vm3, %v704_v63, 0.0  ;;  %v751_v23 = vsel %vm733_vm9, %v709_v2, 0.0 }
 0x1e9   :  { %v705_v9 = vsel %vm657_vm4, %v633_v53, %v681_v1  ;;  %v641_v10 = vadd.f32 %v3338_v51, %v419_v0  ;;  %v636_v11 = vadd.f32 %v3343_v54, %v393_v5  ;;  %v837_v14 = vsel %vm770_vm6, %v3388_v7, -inf }
 0x1ea   :  { %v747_v12 = vsel %vm729_vm7, %v705_v9, 0.0  ;;  %838 = vmax.xlane.f32.xlu1 %v837_v14  ;;  %v595_v54 = vrot.slane %v3304_v3, %v3265_v37  ;;  %v712_v17 = vsel %vm664_vm5, %v640_v49, %v688_v4  ;;  %v771_v28 = vsel %vm770_vm6, %v746_v8, 0.0 }
 0x1eb   :  { %vm660_vm10 = vcmp.gt.f32.partialorder %v636_v11, 0.0  ;;  %v684_v51 = vmul.f32 0.2, %v636_v11  ;;  %v776_v24 = vsel %vm770_vm6, %v747_v12, 0.0  ;;  %v689_v25 = vmul.f32 0.2, %v641_v10 }
 0x1ec   :  { %v481_v19 = vpop.permute.xlu0 %480  ;;  %v404_v21 = vpop.permute.xlu1 %403  ;;  %vm665_vm11 = vcmp.gt.f32.partialorder %v641_v10, 0.0  ;;  %v778_v30 = vadd.f32 %v777_v38, %v776_v24  ;;  %v754_v35 = vsel %vm730_vm2, %v712_v17, 0.0  ;;  %v779_v39 = vsel %vm770_vm6, %v751_v23, 0.0 }
 0x1ed   :  { %v708_v26 = vsel %vm660_vm10, %v636_v11, %v684_v51  ;;  %v638_v27 = vadd.f32 %v587_v56, %v404_v21  ;;  %v773_v48 = vadd.f32 %v772_v34, %v771_v28  ;;  %v3419_v53 = vrot.slane %v571_v60, %v3265_v37 }
 0x1ee   :  { %v750_v3 = vsel %vm732_vm12, %v708_v26, 0.0  ;;  %v780_v45 = vadd.f32 %v779_v39, %v778_v30  ;;  %v713_v57 = vsel %vm665_vm11, %v641_v10, %v689_v25  ;;  %v782_v42 = vsel %vm770_vm6, %v754_v35, 0.0 }
 0x1ef   :  { %vm662_vm13 = vcmp.gt.f32.partialorder %v638_v27, 0.0  ;;  %v686_v36 = vmul.f32 0.2, %v638_v27  ;;  %v774_v49 = vsel %vm770_vm6, %v750_v3, 0.0  ;;  %v755_v60 = vsel %vm731_vm8, %v713_v57, 0.0 }
 0x1f0   :  { %v430_v40 = vpop.permute.xlu0 %429  ;;  %v408_v41 = vpop.permute.xlu1 %407  ;;  %v3425_v2 = vsel %vm812_vm14, %v780_v45, -1e+30  ;;  %v775_v4 = vadd.f32 %v774_v49, %v773_v48  ;;  %v652_v9 = vadd.f32 %v3366_v20, %v481_v19 }
 0x1f1   :  { %v710_v59 = vsel %vm662_vm13, %v638_v27, %v686_v36  ;;  %v643_v61 = vadd.f32 %v595_v54, %v430_v40  ;;  %v639_v63 = vadd.f32 %v587_v56, %v408_v41  ;;  %v828_v56 = vsel %vm770_vm6, %v3425_v2, -inf }
 0x1f2   :  { %v752_v1 = vsel %vm728_vm3, %v710_v59, 0.0  ;;  %v3435_v8 = vsel %vm811_vm15, %v775_v4, -1e+30  ;;  %829 = vmax.xlane.f32.xlu1 %v828_v56  ;;  %vm676_vm13 = vcmp.gt.f32.partialorder %v652_v9, 0.0  ;;  %v700_v25 = vmul.f32 0.2, %v652_v9 }
 0x1f3   :  { %vm667_vm4 = vcmp.gt.f32.partialorder %v643_v61, 0.0  ;;  %v691_v0 = vmul.f32 0.2, %v643_v61  ;;  %vm663_vm5 = vcmp.gt.f32.partialorder %v639_v63, 0.0  ;;  %v687_v5 = vmul.f32 0.2, %v639_v63 }
 0x1f4   :  { %v485_v10 = vpop.permute.xlu0 %484  ;;  %v426_v11 = vpop.permute.xlu1 %425  ;;  %v825_v19 = vsel %vm770_vm6, %v3435_v8, -inf  ;;  %v781_v23 = vsel %vm770_vm6, %v752_v1, 0.0  ;;  %v787_v27 = vsel %vm770_vm6, %v755_v60, 0.0  ;;  %v724_v1 = vsel %vm676_vm13, %v652_v9, %v700_v25 }
 0x1f5   :  { %v715_v12 = vsel %vm667_vm4, %v643_v61, %v691_v0  ;;  %v711_v14 = vsel %vm663_vm5, %v639_v63, %v687_v5  ;;  %v653_v16 = vadd.f32 %v3366_v20, %v485_v10  ;;  %v642_v51 = vadd.f32 %v595_v54, %v426_v11  ;;  %826 = vmax.xlane.f32.xlu0 %v825_v19 }
 0x1f6   :  { %v753_v17 = vsel %vm729_vm7, %v711_v14, 0.0  ;;  %v757_v21 = vsel %vm733_vm9, %v715_v12, 0.0  ;;  %v783_v34 = vadd.f32 %v782_v42, %v781_v23  ;;  %v766_v14 = vsel %vm730_vm2, %v724_v1, 0.0 }
 0x1f7   :  { %vm677_vm10 = vcmp.gt.f32.partialorder %v653_v16, 0.0  ;;  %v701_v24 = vmul.f32 0.2, %v653_v16  ;;  %vm666_vm11 = vcmp.gt.f32.partialorder %v642_v51, 0.0  ;;  %v690_v38 = vmul.f32 0.2, %v642_v51 }
 0x1f8   :  { %v496_v20 = vpop.permute.xlu0 %495  ;;  %v470_v54 = vpop.permute.xlu1 %469  ;;  %v786_v26 = vsel %vm770_vm6, %v753_v17, 0.0  ;;  %v789_v39 = vsel %vm770_vm6, %v757_v21, 0.0  ;;  %v802_v25 = vsel %vm770_vm6, %v766_v14, 0.0 }
 0x1f9   :  { %v714_v28 = vsel %vm666_vm11, %v642_v51, %v690_v38  ;;  %v655_v30 = vadd.f32 %v3419_v53, %v496_v20  ;;  %v650_v3 = vadd.f32 %v3400_v15, %v470_v54  ;;  %v725_v35 = vsel %vm677_vm10, %v653_v16, %v701_v24 }
 0x1fa   :  { %v788_v36 = vadd.f32 %v787_v27, %v786_v26  ;;  %v756_v40 = vsel %vm732_vm12, %v714_v28, 0.0  ;;  %v767_v4 = vsel %vm731_vm8, %v725_v35, 0.0 }
 0x1fb   :  { %vm679_vm4 = vcmp.gt.f32.partialorder %v655_v30, 0.0  ;;  %v703_v41 = vmul.f32 0.2, %v655_v30  ;;  %vm674_vm5 = vcmp.gt.f32.partialorder %v650_v3, 0.0  ;;  %v698_v45 = vmul.f32 0.2, %v650_v3 }
 0x1fc   :  { %v474_v48 = vpop.permute.xlu1 %473  ;;  %v790_v49 = vadd.f32 %v789_v39, %v788_v36  ;;  %v784_v57 = vsel %vm770_vm6, %v756_v40, 0.0  ;;  %v807_v17 = vsel %vm770_vm6, %v767_v4, 0.0 }
 0x1fd   :  { %v722_v59 = vsel %vm674_vm5, %v650_v3, %v698_v45  ;;  %v651_v61 = vadd.f32 %v3400_v15, %v474_v48  ;;  %v785_v63 = vadd.f32 %v784_v57, %v783_v34  ;;  %v727_v42 = vsel %vm679_vm4, %v655_v30, %v703_v41 }
 0x1fe   :  { %v3459_v0 = vsel %vm812_vm14, %v790_v49, -1e+30  ;;  %v764_v15 = vsel %vm728_vm3, %v722_v59, 0.0  ;;  %v769_v51 = vsel %vm733_vm9, %v727_v42, 0.0 }
 0x1ff   :  { %vm675_vm10 = vcmp.gt.f32.partialorder %v651_v61, 0.0  ;;  %v699_v5 = vmul.f32 0.2, %v651_v61  ;;  %v834_v60 = vsel %vm770_vm6, %v3459_v0, -inf  ;;  %v3465_v56 = vsel %vm811_vm15, %v785_v63, -1e+30 }
 0x200   :  { %835 = vmax.xlane.f32.xlu1 %v834_v60  ;;  %v492_v9 = vpop.permute.xlu1 %491  ;;  %v831_v10 = vsel %vm770_vm6, %v3465_v56, -inf  ;;  %v801_v23 = vsel %vm770_vm6, %v764_v15, 0.0  ;;  %v809_v38 = vsel %vm770_vm6, %v769_v51, 0.0 }
 0x201   :  { %v723_v11 = vsel %vm675_vm10, %v651_v61, %v699_v5  ;;  %v654_v12 = vadd.f32 %v3419_v53, %v492_v9  ;;  %832 = vmax.xlane.f32.xlu0 %v831_v10  ;;  %v803_v26 = vadd.f32 %v802_v25, %v801_v23 }
 0x202   :  { %v765_v16 = vsel %vm729_vm7, %v723_v11, 0.0 }
 0x203   :  { %vm678_vm3 = vcmp.gt.f32.partialorder %v654_v12, 0.0  ;;  %v702_v19 = vmul.f32 0.2, %v654_v12  ;;  %v806_v21 = vsel %vm770_vm6, %v765_v16, 0.0 }
 0x204   :  { %v808_v24 = vadd.f32 %v807_v17, %v806_v21 }
 0x205   :  { %v726_v53 = vsel %vm678_vm3, %v654_v12, %v702_v19 }
 0x206   :  { %v810_v20 = vadd.f32 %v809_v38, %v808_v24  ;;  %v768_v54 = vsel %vm732_vm12, %v726_v53, 0.0 }
 0x207   :  { %v804_v27 = vsel %vm770_vm6, %v768_v54, 0.0 }
 0x208   :  { %v824_v28 = vsel %vm812_vm14, %v810_v20, -1e+30  ;;  %v805_v30 = vadd.f32 %v804_v27, %v803_v26 }
 0x209   :  { %v846_v3 = vsel %vm770_vm6, %v824_v28, -inf }
 0x20a   :  { %847 = vmax.xlane.f32.xlu1 %v846_v3  ;;  %v823_v34 = vsel %vm811_vm15, %v805_v30, -1e+30  ;;  %v2769_v30 = vld [vmem:[%s3907_s3 + $0x28] sm:$0xff]  ;;  %v2770_v3 = vld [vmem:[%s3907_s3 + $0x30] sm:$0xff] }
 0x20b   :  { %v843_v35 = vsel %vm770_vm6, %v823_v34, -inf }
 0x20c   :  { %844 = vmax.xlane.f32.xlu0 %v843_v35 }
 0x222   :  { %3030 = vrot.lane.b32.xlu0 %v3275_v44, %s3148_s25 }
 0x274   :  { %v842_v39 = vpop.xlane.xlu0 %841 }
 0x275   :  { %v854_v45 = vsub.f32 %v3378_v58, %v842_v39 }
 0x277   :  { %v839_v36 = vpop.xlane.xlu1 %838  ;;  %v867_v59 = vmul.f32 1.442695, %v854_v45 }
 0x278   :  { %v853_v57 = vsub.f32 %v3388_v7, %v839_v36 }
 0x27a   :  { %v865_v42 = vmul.f32 1.442695, %v853_v57 }
 0x27f   :  { %v830_v40 = vpop.xlane.xlu1 %829 }
 0x280   :  { %v850_v61 = vsub.f32 %v3425_v2, %v830_v40 }
 0x282   :  { %v827_v41 = vpop.xlane.xlu0 %826  ;;  %v859_v15 = vmul.f32 1.442695, %v850_v61 }
 0x283   :  { %v849_v5 = vsub.f32 %v3435_v8, %v827_v41 }
 0x285   :  { %v857_v11 = vmul.f32 1.442695, %v849_v5  ;;  %v2777_v5 = vld [vmem:[%s3908_s4 + $0x28] sm:$0xff] }
 0x28d   :  { %v836_v22 = vpop.xlane.xlu1 %835 }
 0x28e   :  { %v833_v48 = vpop.xlane.xlu0 %832  ;;  %v852_v58 = vsub.f32 %v3459_v0, %v836_v22 }
 0x28f   :  { %v851_v2 = vsub.f32 %v3465_v56, %v833_v48 }
 0x290   :  { %v863_v14 = vmul.f32 1.442695, %v852_v58 }
 0x291   :  { %v861_v8 = vmul.f32 1.442695, %v851_v2 }
 0x297   :  { %v848_v49 = vpop.xlane.xlu1 %847 }
 0x298   :  { %v856_v13 = vsub.f32 %v824_v28, %v848_v49  ;;  %v2768_v28 = vld [vmem:[%s3907_s3 + $0x20] sm:$0xff] }
 0x299   :  { %v845_v63 = vpop.xlane.xlu0 %844 }
 0x29a   :  { %v871_v1 = vmul.f32 1.442695, %v856_v13  ;;  %v855_v4 = vsub.f32 %v823_v34, %v845_v63  ;;  %v2771_v34 = vld [vmem:[%s3907_s3 + $0x38] sm:$0xff] }
 0x29c   :  { %3059 = vpow2.f32 %v871_v1  ;;  %v869_v60 = vmul.f32 1.442695, %v855_v4 }
 0x29d   :  { %3061 = vpow2.f32 %v867_v59  ;;  %v3031_v9 = vpop.permute.xlu0 %3030 }
 0x29e   :  { %3063 = vpow2.f32 %v869_v60  ;;  %v3033_v10 = vunpack.i.h.bf16 %v3031_v9  ;;  %v3032_v7 = vunpack.i.l.bf16 %v3031_v9  ;;  %v2778_v60 = vld [vmem:[%s3908_s4 + $0x30] sm:$0xff] }
 0x29f   :  { %3065 = vpow2.f32 %v865_v42  ;;  %v2776_v42 = vld [vmem:[%s3908_s4 + $0x20] sm:$0xff] }
 0x2a0   :  { %v2982_v12 = vpack.c.bf16 %v3033_v10, %v3032_v7  ;;  %3067 = vpow2.f32 %v859_v15  ;;  %v2779_v15 = vld [vmem:[%s3908_s4 + $0x38] sm:$0xff] }
 0x2a1   :  { %3069 = vpow2.f32 %v857_v11 }
 0x2a2   :  { %2983 = vmatprep.subr.bf16.mxu0 %v2982_v12  ;;  %3071 = vpow2.f32 %v863_v14 }
 0x2a3   :  { %2985 = vmatpush3.bf16.msra.mxu0 %v2982_v12  ;;  %3073 = vpow2.f32 %v861_v8 }
 0x2a4   :  { %2992 = vmatprep.subr.msk.bf16.mxu0 %vm3206_vm1, %v3239_v18 }
 0x2a6   :  { %v3503_v16 = vpop.eup %3059 }
 0x2a7   :  { %v3062_v0 = vpop.eup %3061  ;;  %v894_v51 = vsel %vm770_vm6, %v3503_v16, 0.0 }
 0x2a8   :  { %v3507_v17 = vpop.eup %3063  ;;  %895 = vadd.xlane.f32.xlu1 %v894_v51  ;;  %v888_v21 = vsel %vm770_vm6, %v3062_v0, 0.0 }
 0x2a9   :  { %v891_v56 = vsel %vm770_vm6, %v3507_v17, 0.0  ;;  %v3066_v19 = vpop.eup %3065 }
 0x2aa   :  { %892 = vadd.xlane.f32.xlu0 %v891_v56  ;;  %v3512_v23 = vpop.eup %3067  ;;  %v885_v24 = vsel %vm770_vm6, %v3066_v19, 0.0 }
 0x2ab   :  { %v3070_v53 = vpop.eup %3069  ;;  %v876_v38 = vsel %vm770_vm6, %v3512_v23, 0.0 }
 0x2ac   :  { %889 = vadd.xlane.f32.xlu1 %v888_v21  ;;  %v3072_v25 = vpop.eup %3071  ;;  %v873_v20 = vsel %vm770_vm6, %v3070_v53, 0.0 }
 0x2ad   :  { %v3074_v54 = vpop.eup %3073  ;;  %v882_v26 = vsel %vm770_vm6, %v3072_v25, 0.0 }
 0x2ae   :  { %886 = vadd.xlane.f32.xlu0 %v885_v24  ;;  %v879_v27 = vsel %vm770_vm6, %v3074_v54, 0.0 }
 0x2b0   :  { %877 = vadd.xlane.f32.xlu1 %v876_v38 }
 0x2b2   :  { %874 = vadd.xlane.f32.xlu0 %v873_v20 }
 0x2b4   :  { %883 = vadd.xlane.f32.xlu1 %v882_v26 }
 0x2b6   :  { %880 = vadd.xlane.f32.xlu0 %v879_v27 }
 0x2e3   :  { %1439 = vxpose.xlu0.b32.start [1/4] (short) (narrow) %v2768_v28, 16 }
 0x2e7   :  { %1440 = vxpose.xlu0.b32.cont [2/4] (short) (narrow) %v2769_v30, 16 }
 0x2eb   :  { %1441 = vxpose.xlu0.b32.cont [3/4] (short) (narrow) %v2770_v3, 16 }
 0x2ef   :  { %1442 = vxpose.xlu0.b32.end [4/4] (short) (narrow) %v2771_v34, 16 }
 0x318   :  { %3040 = vrot.lane.b32.xlu0 %v3275_v44, %s3149_s9 }
 0x335   :  { %v896_v35 = vpop.xlane.xlu1 %895 }
 0x337   :  { %v893_v36 = vpop.xlane.xlu0 %892 }
 0x339   :  { %v890_v39 = vpop.xlane.xlu1 %889 }
 0x33b   :  { %v887_v40 = vpop.xlane.xlu0 %886 }
 0x33c   :  { %3075 = vrcp.f32 %v887_v40 }
 0x33d   :  { %v878_v41 = vpop.xlane.xlu1 %877  ;;  %3077 = vrcp.f32 %v890_v39 }
 0x33f   :  { %v875_v22 = vpop.xlane.xlu0 %874 }
 0x341   :  { %v884_v45 = vpop.xlane.xlu1 %883 }
 0x343   :  { %v881_v48 = vpop.xlane.xlu0 %880 }
 0x344   :  { %3079 = vrcp.f32 %v881_v48 }
 0x345   :  { %3081 = vrcp.f32 %v884_v45 }
 0x346   :  { %v3076_v49 = vpop.eup %3075  ;;  %3083 = vrcp.f32 %v875_v22 }
 0x347   :  { %v906_v57 = vmul.f32 %v3076_v49, %v3066_v19  ;;  %v3078_v13 = vpop.eup %3077  ;;  %3085 = vrcp.f32 %v878_v41 }
 0x348   :  { %v908_v59 = vmul.f32 %v3078_v13, %v3062_v0  ;;  %3087 = vrcp.f32 %v893_v36 }
 0x349   :  { %1165 = vxpose.xlu1.b32.start [1/2] (short) (narrow) %v906_v57, 16  ;;  %3089 = vrcp.f32 %v896_v35 }
 0x34d   :  { %1166 = vxpose.xlu1.b32.end [2/2] (short) (narrow) %v908_v59, 16 }
 0x34e   :  { %v3080_v61 = vpop.eup %3079 }
 0x34f   :  { %v902_v63 = vmul.f32 %v3080_v61, %v3074_v54  ;;  %v3082_v1 = vpop.eup %3081 }
 0x350   :  { %v904_v4 = vmul.f32 %v3082_v1, %v3072_v25  ;;  %v3084_v9 = vpop.eup %3083 }
 0x351   :  { %1031 = vxpose.xlu0.b32.start [1/2] (short) (narrow) %v902_v63, 16  ;;  %v898_v58 = vmul.f32 %v3084_v9, %v3070_v53  ;;  %v3086_v10 = vpop.eup %3085 }
 0x352   :  { %v900_v7 = vmul.f32 %v3086_v10, %v3512_v23  ;;  %v3088_v11 = vpop.eup %3087 }
 0x353   :  { %v910_v2 = vmul.f32 %v3088_v11, %v3507_v17  ;;  %v3090_v12 = vpop.eup %3089 }
 0x354   :  { %v912_v14 = vmul.f32 %v3090_v12, %v3503_v16 }
 0x355   :  { %1032 = vxpose.xlu0.b32.end [2/2] (short) (narrow) %v904_v4, 16 }
 0x359   :  { %1557 = vxpose.xlu0.b32.start [1/4] (short) (narrow) %v2776_v42, 16 }
 0x35d   :  { %1558 = vxpose.xlu0.b32.cont [2/4] (short) (narrow) %v2777_v5, 16 }
 0x361   :  { %1559 = vxpose.xlu0.b32.cont [3/4] (short) (narrow) %v2778_v60, 16 }
 0x363   :  { %v1455_v0 = vpop.trf.xlu0 }
 0x365   :  { %1560 = vxpose.xlu0.b32.end [4/4] (short) (narrow) %v2779_v15, 16 }
 0x367   :  { %v1456_v51 = vpop.trf.xlu0 }
 0x36b   :  { %3035 = vrot.lane.b32.xlu1 %v3275_v44, %s3150_s17 }
 0x38a   :  { %v3041_v21 = vpop.permute.xlu0 %3040 }
 0x38b   :  { %v3043_v53 = vunpack.i.h.bf16 %v3041_v21  ;;  %v3042_v38 = vunpack.i.l.bf16 %v3041_v21 }
 0x38d   :  { %v2986_v20 = vpack.c.bf16 %v3043_v53, %v3042_v38 }
 0x394   :  { %913 = vxpose.xlu1.b32.start [1/2] (short) (narrow) %v898_v58, 16  ;;  %v3620_v58 = vld [vmem:[%s3905_s1 + $0x4] sm:$0xf]   ;;  %s3151_s1 = smov 8  }
 0x398   :  { %914 = vxpose.xlu1.b32.end [2/2] (short) (narrow) %v900_v7, 16 }
 0x39c   :  { %1297 = vxpose.xlu1.b32.start [1/2] (short) (narrow) %v910_v2, 16 }
 0x3a0   :  { %1298 = vxpose.xlu1.b32.end [2/2] (short) (narrow) %v912_v14, 16 }
 0x3c9   :  { %v1181_v44 = vpop.trf.xlu1 }
 0x3ca   :  { %2902 = vmatprep.mubr.msk.f32.mxu0 %vm770_vm6, %v1181_v44 }
 0x3cd   :  { %v1182_v8 = vpop.trf.xlu1 }
 0x3ce   :  { %2903 = vmatmul.mubr.msk.f32.vlgmr.msra.gmra.mrb[6].mxu0 %vm770_vm6, %v1182_v8  ;;  %v3627_v8 = vunpack.c.0.s8 %v3620_v58 }
 0x3cf   :  { %2995 = vmatpush3.bf16.xpose.msk.msra.mxu0 %vm3206_vm1, %v3239_v18  ;;  %2916 = vmatprep.mubr.msk.f32.mxu0 %vm29_vm0, %v1455_v0 }
 0x3d0   :  { %3003 = vmatprep.subr.bf16.mxu0 %v3278_v46  ;;  %vm2035_vm7 = vcmp.eq.s32.totalorder %v3627_v8, 2  ;;  %vm2033_vm8 = vcmp.eq.s32.totalorder %v3627_v8, 1  ;;  %vm2037_vm12 = vcmp.eq.s32.totalorder %v3627_v8, 3  ;;  %vm2115_vm14 = vcmp.gt.s32.totalorder %v3627_v8, 0 }
 0x3d1   :  { %v1047_v24 = vpop.trf.xlu0 }
 0x3d5   :  { %v1048_v54 = vpop.trf.xlu0 }
 0x3d6   :  { %2917 = vmatmul.mubr.msk.f32.vlgmr.msra.gmra.mrb[8].mxu0 %vm29_vm0, %v1456_v51 }
 0x3d7   :  { %3005 = vmatpush3.bf16.msra.mxu0 %v3278_v46 }
 0x3d9   :  { %v1573_v27 = vpop.trf.xlu0 }
 0x3dd   :  { %v3036_v16 = vpop.permute.xlu1 %3035  ;;  %v1574_v28 = vpop.trf.xlu0 }
 0x3de   :  { %v3038_v17 = vunpack.i.h.bf16 %v3036_v16  ;;  %v3037_v56 = vunpack.i.l.bf16 %v3036_v16 }
 0x3e0   :  { %v2978_v19 = vpack.c.bf16 %v3038_v17, %v3037_v56 }
 0x3e2   :  { %2979 = vmatprep.subr.bf16.mxu1 %v2978_v19 }
 0x414   :  { %v929_v23 = vpop.trf.xlu1 }
 0x415   :  { %2888 = vmatprep.mubr.msk.f32.mxu1 %vm770_vm6, %v929_v23 }
 0x418   :  { %v930_v25 = vpop.trf.xlu1 }
 0x419   :  { %2889 = vmatmul.mubr.msk.f32.vlgmr.msra.gmra.mrb[2].mxu1 %vm770_vm6, %v930_v25 }
 0x41a   :  { %2981 = vmatpush3.bf16.msra.mxu1 %v2978_v19  ;;  %2895 = vmatprep.mubr.msk.f32.mxu1 %vm770_vm6, %v1047_v24 }
 0x41b   :  { %2987 = vmatprep.subr.bf16.mxu1 %v2986_v20 }
 0x41c   :  { %v1313_v46 = vpop.trf.xlu1 }
 0x41d   :  { %2896 = vmatmul.mubr.msk.f32.vlgmr.msra.gmra.mrb[4].mxu1 %vm770_vm6, %v1048_v54 }
 0x41e   :  { %2989 = vmatpush3.bf16.msra.mxu1 %v2986_v20  ;;  %2909 = vmatprep.mubr.msk.f32.mxu1 %vm770_vm6, %v1313_v46 }
 0x41f   :  { %2998 = vmatprep.subr.msk.bf16.mxu1 %vm3206_vm1, %v3239_v18 }
 0x420   :  { %v1314_v26 = vpop.trf.xlu1 }
 0x421   :  { %2910 = vmatmul.mubr.msk.f32.vlgmr.msra.gmra.mrb[6].mxu1 %vm770_vm6, %v1314_v26 }
 0x422   :  { %2923 = vmatprep.mubr.msk.f32.mxu1 %vm29_vm0, %v1573_v27 }
 0x427   :  { %3001 = vmatpush3.bf16.xpose.msk.msra.mxu1 %vm3206_vm1, %v3239_v18 }
 0x42e   :  { %2924 = vmatmul.mubr.msk.f32.vlgmr.msra.gmra.mrb[8].mxu1 %vm29_vm0, %v1574_v28  ;;  %vm1028_vm0 = vcmask 64512  }
 0x4a1   :  { %v3574_v30 = vpop.f32.mrb[6].mxu0 }
 0x4a2   :  { %v3576_v3 = vpop.f32.mrb[7].mxu0 }
 0x4a9   :  { %v2918_v34 = vpop.f32.mrb[8].mxu0 }
 0x4aa   :  { %v1543_v35 = vpop.f32.mrb[9].mxu0  ;;  %v1783_v36 = vrot.slane %v2918_v34, %v3281_v47  ;;  %v1772_v39 = vrot.slane %v2918_v34, %v3273_v43  ;;  %v1761_v40 = vrot.slane %v2918_v34, %v3265_v37  ;;  %v1794_v6 = vrot.slane %v2918_v34, %v3289_v52 }
 0x4ab   :  { %v1684_v18 = vrot.slane %v1543_v35, %v3273_v43  ;;  %v1673_v41 = vrot.slane %v1543_v35, %v3265_v37  ;;  %v1728_v22 = vrot.slane %v1543_v35, %v422_v55  ;;  %v1706_v45 = vrot.slane %v1543_v35, %v3289_v52 }
 0x4ac   :  { %1785 = vbcast.lane.b32.xlu0 %v1783_v36, 256  ;;  %1774 = vbcast.lane.b32.xlu1 %v1772_v39, 256  ;;  %v1739_v48 = vrot.slane %v1543_v35, %v433_v33  ;;  %v1717_v49 = vrot.slane %v1543_v35, %v411_v50  ;;  %v1750_v43 = vrot.slane %v1543_v35, %v444_v32 }
 0x4ad   :  { %v1695_v55 = vrot.slane %v1543_v35, %v3281_v47 }
 0x4b0   :  { %1778 = vbcast.lane.b32.xlu0 %v1772_v39, 264  ;;  %1763 = vbcast.lane.b32.xlu1 %v1761_v40, 256 }
 0x4b4   :  { %1796 = vbcast.lane.b32.xlu0 %v1794_v6, 256  ;;  %1789 = vbcast.lane.b32.xlu1 %v1783_v36, 264 }
 0x4b8   :  { %1686 = vbcast.lane.b32.xlu0 %v1684_v18, 256  ;;  %1675 = vbcast.lane.b32.xlu1 %v1673_v41, 256 }
 0x4bc   :  { %1730 = vbcast.lane.b32.xlu0 %v1728_v22, 256  ;;  %1708 = vbcast.lane.b32.xlu1 %v1706_v45, 256 }
 0x4c0   :  { %1741 = vbcast.lane.b32.xlu0 %v1739_v48, 256  ;;  %1719 = vbcast.lane.b32.xlu1 %v1717_v49, 256 }
 0x4c4   :  { %1734 = vbcast.lane.b32.xlu0 %v1728_v22, 264  ;;  %1679 = vbcast.lane.b32.xlu1 %v1673_v41, 264 }
 0x4c8   :  { %1756 = vbcast.lane.b32.xlu0 %v1750_v43, 264  ;;  %1690 = vbcast.lane.b32.xlu1 %v1684_v18, 264 }
 0x4cc   :  { %1800 = vbcast.lane.b32.xlu0 %v1794_v6, 264  ;;  %1697 = vbcast.lane.b32.xlu1 %v1695_v55, 256 }
 0x4d0   :  { %1712 = vbcast.lane.b32.xlu1 %v1706_v45, 264 }
 0x4d4   :  { %1723 = vbcast.lane.b32.xlu1 %v1717_v49, 264 }
 0x4d8   :  { %1701 = vbcast.lane.b32.xlu1 %v1695_v55, 264 }
 0x4dc   :  { %1752 = vbcast.lane.b32.xlu1 %v1750_v43, 256 }
 0x4e0   :  { %1745 = vbcast.lane.b32.xlu1 %v1739_v48, 264 }
 0x4e4   :  { %1767 = vbcast.lane.b32.xlu1 %v1761_v40, 264 }
 0x4ec   :  { %v2890_v33 = vpop.f32.mrb[2].mxu1 }
 0x4ed   :  { %v1027_v50 = vmax.f32 %v2890_v33, 0.0  ;;  %v1017_v52 = vpop.f32.mrb[3].mxu1 }
 0x4ee   :  { %v1026_v57 = vmax.f32 %v1017_v52, 0.0 }
 0x4ef   :  { %1030 = vst.msk [vmem:[#allocation2 + $0x8] sm:$0xff] %vm1028_vm0, %v1027_v50 }
 0x4f0   :  { %1029 = vst.msk [vmem:[#allocation2] sm:$0xff] %vm1028_vm0, %v1026_v57  ;;  %v3596_v31 = vpop.f32.mrb[4].mxu1 }
 0x4f1   :  { %v3598_v32 = vpop.f32.mrb[5].mxu1 }
 0x4f4   :  { %v3600_v47 = vpop.f32.mrb[6].mxu1 }
 0x4f5   :  { %v3602_v13 = vpop.f32.mrb[7].mxu1 }
 0x501   :  { %v2925_v59 = vpop.f32.mrb[8].mxu1 }
 0x502   :  { %v1661_v61 = vpop.f32.mrb[9].mxu1  ;;  %v1859_v63 = vrot.slane %v2925_v59, %v3299_v62 }
 0x503   :  { %v1804_v60 = vcombine.high %v1661_v61, %v1661_v61  ;;  %v1811_v10 = vrot.slane %v1661_v61, %v3299_v62 }
 0x504   :  { %v1860_v1 = vcombine.high %v1859_v63, %v1859_v63  ;;  %v3606_v4 = vrot.slane %v1859_v63, %v3299_v62 }
 0x505   :  { %v1818_v2 = vrot.slane %v1804_v60, %v3299_v62  ;;  %v1819_v16 = vcombine.high %v1811_v10, %v1811_v10  ;;  %v1827_v28 = vrot.slane %v1811_v10, %v3299_v62 }
 0x506   :  { %v1875_v42 = vcombine.high %v3606_v4, %v3606_v4  ;;  %v1874_v5 = vrot.slane %v1860_v1, %v3299_v62  ;;  %v3682_v10 = vrot.slane %v3606_v4, %v3265_v37 }
 0x507   :  { %v1820_v19 = vcombine.high %v1818_v2, %v1818_v2  ;;  %v1841_v53 = vrot.slane %v1819_v16, %v3299_v62  ;;  %v3660_v45 = vrot.slane %v1827_v28, %v3265_v37  ;;  %v1834_v49 = vrot.slane %v1818_v2, %v3299_v62 }
 0x508   :  { %v3612_v15 = vrot.slane %v1875_v42, %v3265_v37  ;;  %v3615_v9 = vrot.slane %v1874_v5, %v3265_v37  ;;  %v1876_v44 = vcombine.high %v1874_v5, %v1874_v5  ;;  %v1849_v2 = vcombine.high %v1827_v28, %v1827_v28 }
 0x509   :  { %v3638_v20 = vrot.slane %v1820_v19, %v3299_v62  ;;  %v1851_v46 = vcombine.high %v1841_v53, %v1841_v53  ;;  %v3657_v22 = vrot.slane %v1841_v53, %v3265_v37  ;;  %v3669_v59 = vrot.slane %v1834_v49, %v3265_v37 }
 0x50a   :  { %v3632_v21 = vrot.slane %v1876_v44, %v3265_v37  ;;  %v3688_v16 = vunpack.c.1.s8 %v3620_v58 }
 0x50b   :  { %v3648_v39 = vrot.slane %v3638_v20, %v3265_v37  ;;  %v3652_v6 = vrot.slane %v1851_v46, %v3265_v37 }
 0x50c   :  { %vm2034_vm10 = vcmp.eq.s32.totalorder %v3688_v16, 1 }
 0x51e   :  { %v1786_v7 = vpop.permute.xlu0 %1785  ;;  %v1775_v11 = vpop.permute.xlu1 %1774 }
 0x51f   :  { %v1957_v12 = vadd.f32 %v3612_v15, %v1786_v7  ;;  %v1955_v14 = vadd.f32 %v3615_v9, %v1775_v11 }
 0x521   :  { %v2005_v0 = vmul.f32 0.2, %v1957_v12  ;;  %v2003_v51 = vmul.f32 0.2, %v1955_v14  ;;  %vm1981_vm1 = vcmp.gt.f32.partialorder %v1957_v12, 0.0  ;;  %vm1979_vm2 = vcmp.gt.f32.partialorder %v1955_v14, 0.0 }
 0x522   :  { %v1779_v17 = vpop.permute.xlu0 %1778  ;;  %v3629_v56 = vpop.permute.xlu1 %1763 }
 0x523   :  { %v2029_v23 = vsel %vm1981_vm1, %v1957_v12, %v2005_v0  ;;  %v2027_v24 = vsel %vm1979_vm2, %v1955_v14, %v2003_v51  ;;  %v1956_v4 = vadd.f32 %v3615_v9, %v1779_v17  ;;  %v3699_v9 = vrot.slane %v1849_v2, %v3265_v37 }
 0x524   :  { %v2071_v26 = vsel %vm2035_vm7, %v2029_v23, 0.0  ;;  %v2069_v27 = vsel %vm2033_vm8, %v2027_v24, 0.0  ;;  %v1953_v24 = vadd.f32 %v3682_v10, %v3629_v56  ;;  %v1852_v56 = vcombine.high %v3638_v20, %v3638_v20 }
 0x525   :  { %v2105_v18 = vsel %vm770_vm6, %v2069_v27, 0.0  ;;  %v2106_v41 = vsel %vm770_vm6, %v2071_v26, 0.0  ;;  %v2004_v17 = vmul.f32 0.2, %v1956_v4  ;;  %vm1980_vm3 = vcmp.gt.f32.partialorder %v1956_v4, 0.0 }
 0x526   :  { %v1797_v38 = vpop.permute.xlu0 %1796  ;;  %v1790_v25 = vpop.permute.xlu1 %1789  ;;  %v2107_v33 = vadd.f32 %v2106_v41, %v2105_v18  ;;  %vm2036_vm1 = vcmp.eq.s32.totalorder %v3688_v16, 2  ;;  %v2001_v20 = vmul.f32 0.2, %v1953_v24  ;;  %vm1977_vm2 = vcmp.gt.f32.partialorder %v1953_v24, 0.0 }
 0x527   :  { %v1959_v54 = vadd.f32 %v3632_v21, %v1797_v38  ;;  %v1850_v38 = vcombine.high %v1834_v49, %v1834_v49  ;;  %v1958_v46 = vadd.f32 %v3612_v15, %v1790_v25 }
 0x529   :  { %vm1983_vm9 = vcmp.gt.f32.partialorder %v1959_v54, 0.0  ;;  %v2007_v34 = vmul.f32 0.2, %v1959_v54  ;;  %v2006_v41 = vmul.f32 0.2, %v1958_v46 }
 0x52a   :  { %v1687_v35 = vpop.permute.xlu0 %1686  ;;  %v1676_v36 = vpop.permute.xlu1 %1675 }
 0x52b   :  { %v2031_v40 = vsel %vm1983_vm9, %v1959_v54, %v2007_v34  ;;  %v1939_v61 = vadd.f32 %v3657_v22, %v1687_v35  ;;  %v1937_v63 = vadd.f32 %v3660_v45, %v1676_v36  ;;  %vm1982_vm9 = vcmp.gt.f32.partialorder %v1958_v46, 0.0 }
 0x52c   :  { %v2073_v48 = vsel %vm2037_vm12, %v2031_v40, 0.0  ;;  %v3713_v40 = vrot.slane %v1850_v38, %v3265_v37 }
 0x52d   :  { %v2108_v50 = vsel %vm770_vm6, %v2073_v48, 0.0  ;;  %v1987_v12 = vmul.f32 0.2, %v1939_v61  ;;  %v1985_v14 = vmul.f32 0.2, %v1937_v63  ;;  %vm1961_vm13 = vcmp.gt.f32.partialorder %v1937_v63, 0.0 }
 0x52e   :  { %v1731_v43 = vpop.permute.xlu0 %1730  ;;  %v1709_v55 = vpop.permute.xlu1 %1708  ;;  %v2109_v1 = vadd.f32 %v2108_v50, %v2107_v33  ;;  %vm1963_vm5 = vcmp.gt.f32.partialorder %v1939_v61, 0.0  ;;  %v2028_v33 = vsel %vm1980_vm3, %v1956_v4, %v2004_v17  ;;  %v3721_v50 = vrot.slane %v1852_v56, %v3265_v37 }
 0x52f   :  { %v1947_v52 = vadd.f32 %v3648_v39, %v1731_v43  ;;  %v1943_v57 = vadd.f32 %v3652_v6, %v1709_v55  ;;  %v2009_v26 = vsel %vm1961_vm13, %v1937_v63, %v1985_v14  ;;  %v2011_v28 = vsel %vm1963_vm5, %v1939_v61, %v1987_v12 }
 0x530   :  { %v3678_v60 = vsel %vm2115_vm14, %v2109_v1, -1e+30  ;;  %v2051_v36 = vsel %vm2033_vm8, %v2009_v26, 0.0  ;;  %v2053_v48 = vsel %vm2035_vm7, %v2011_v28, 0.0 }
 0x531   :  { %v1991_v62 = vmul.f32 0.2, %v1943_v57  ;;  %vm1967_vm15 = vcmp.gt.f32.partialorder %v1943_v57, 0.0  ;;  %v1995_v7 = vmul.f32 0.2, %v1947_v52  ;;  %vm1971_vm11 = vcmp.gt.f32.partialorder %v1947_v52, 0.0 }
 0x532   :  { %v3674_v42 = vpop.permute.xlu0 %1741  ;;  %v1720_v5 = vpop.permute.xlu1 %1719  ;;  %v2147_v44 = vsel %vm770_vm6, %v3678_v60, -inf  ;;  %v2075_v63 = vsel %vm770_vm6, %v2051_v36, 0.0 }
 0x533   :  { %v1945_v11 = vadd.f32 %v3669_v59, %v1720_v5  ;;  %v2015_v0 = vsel %vm1967_vm15, %v1943_v57, %v1991_v62  ;;  %2148 = vmax.xlane.f32.xlu1 %v2147_v44  ;;  %v2019_v53 = vsel %vm1971_vm11, %v1947_v52, %v1995_v7  ;;  %v2076_v7 = vsel %vm770_vm6, %v2053_v48, 0.0 }
 0x534   :  { %v2057_v27 = vsel %vm2033_vm8, %v2015_v0, 0.0  ;;  %v2061_v15 = vsel %vm2037_vm12, %v2019_v53, 0.0  ;;  %vm2038_vm15 = vcmp.eq.s32.totalorder %v3688_v16, 3 }
 0x535   :  { %vm1969_vm4 = vcmp.gt.f32.partialorder %v1945_v11, 0.0  ;;  %v1993_v51 = vmul.f32 0.2, %v1945_v11  ;;  %v2085_v18 = vsel %vm770_vm6, %v2057_v27, 0.0  ;;  %v2088_v55 = vsel %vm770_vm6, %v2061_v15, 0.0 }
 0x536   :  { %v1735_v19 = vpop.permute.xlu0 %1734  ;;  %v1680_v23 = vpop.permute.xlu1 %1679 }
 0x537   :  { %v2017_v54 = vsel %vm1969_vm4, %v1945_v11, %v1993_v51  ;;  %v1948_v1 = vadd.f32 %v3648_v39, %v1735_v19  ;;  %v2030_v11 = vsel %vm1982_vm9, %v1958_v46, %v2006_v41  ;;  %v1938_v2 = vadd.f32 %v3660_v45, %v1680_v23 }
 0x538   :  { %v2059_v58 = vsel %vm2035_vm7, %v2017_v54, 0.0  ;;  %v1949_v39 = vadd.f32 %v3713_v40, %v3674_v42  ;;  %v2077_v51 = vadd.f32 %v2076_v7, %v2075_v63  ;;  %v2070_v54 = vsel %vm2034_vm10, %v2028_v33, 0.0 }
 0x539   :  { %v2086_v25 = vsel %vm770_vm6, %v2059_v58, 0.0  ;;  %vm1972_vm4 = vcmp.gt.f32.partialorder %v1948_v1, 0.0  ;;  %v1996_v19 = vmul.f32 0.2, %v1948_v1  ;;  %vm1962_vm3 = vcmp.gt.f32.partialorder %v1938_v2, 0.0 }
 0x53a   :  { %v3701_v34 = vpop.permute.xlu0 %1756  ;;  %v1691_v35 = vpop.permute.xlu1 %1690  ;;  %v2087_v49 = vadd.f32 %v2086_v25, %v2085_v18  ;;  %v1986_v23 = vmul.f32 0.2, %v1938_v2  ;;  %v2072_v46 = vsel %vm2036_vm1, %v2030_v11, 0.0  ;;  %vm1973_vm9 = vcmp.gt.f32.partialorder %v1949_v39, 0.0 }
 0x53b   :  { %v1940_v43 = vadd.f32 %v3657_v22, %v1691_v35  ;;  %v3728_v22 = vsel %vm1977_vm2, %v1953_v24, %v2001_v20  ;;  %v1997_v58 = vmul.f32 0.2, %v1949_v39  ;;  %v2020_v56 = vsel %vm1972_vm4, %v1948_v1, %v1996_v19 }
 0x53c   :  { %v2089_v61 = vadd.f32 %v2088_v55, %v2087_v49  ;;  %v2010_v35 = vsel %vm1962_vm3, %v1938_v2, %v1986_v23  ;;  %v1952_v20 = vadd.f32 %v3721_v50, %v3701_v34  ;;  %v2110_v49 = vsel %vm770_vm6, %v2070_v54, 0.0 }
 0x53d   :  { %v1988_v12 = vmul.f32 0.2, %v1940_v43  ;;  %vm1964_vm13 = vcmp.gt.f32.partialorder %v1940_v43, 0.0  ;;  %v2021_v55 = vsel %vm1973_vm9, %v1949_v39, %v1997_v58  ;;  %v2052_v33 = vsel %vm2034_vm10, %v2010_v35, 0.0 }
 0x53e   :  { %v1801_v52 = vpop.permute.xlu0 %1800  ;;  %v1698_v57 = vpop.permute.xlu1 %1697  ;;  %v3733_v37 = vsel %vm2115_vm14, %v2089_v61, -1e+30  ;;  %v2062_v61 = vsel %vm2038_vm15, %v2020_v56, 0.0  ;;  %v2063_v11 = vsel %vm2033_vm8, %v2021_v55, 0.0 }
 0x53f   :  { %v1960_v62 = vadd.f32 %v3632_v21, %v1801_v52  ;;  %v1941_v5 = vadd.f32 %v3699_v9, %v1698_v57  ;;  %v2135_v44 = vsel %vm770_vm6, %v3733_v37, -inf  ;;  %v2012_v24 = vsel %vm1964_vm13, %v1940_v43, %v1988_v12 }
 0x540   :  { %2136 = vmax.xlane.f32.xlu0 %v2135_v44  ;;  %v2054_v15 = vsel %vm2036_vm1, %v2012_v24, 0.0  ;;  %vm2116_vm13 = vcmp.gt.s32.totalorder %v3688_v16, 0  ;;  %v2111_v43 = vsel %vm770_vm6, %v2072_v46, 0.0  ;;  %v2093_v44 = vsel %vm770_vm6, %v2062_v61, 0.0 }
 0x541   :  { %vm1965_vm11 = vcmp.gt.f32.partialorder %v1941_v5, 0.0  ;;  %v1989_v21 = vmul.f32 0.2, %v1941_v5  ;;  %v2008_v14 = vmul.f32 0.2, %v1960_v62  ;;  %vm1984_vm5 = vcmp.gt.f32.partialorder %v1960_v62, 0.0 }
 0x542   :  { %v1713_v0 = vpop.permute.xlu1 %1712  ;;  %v2081_v63 = vsel %vm770_vm6, %v2054_v15, 0.0  ;;  %v2112_v12 = vadd.f32 %v2111_v43, %v2110_v49 }
 0x543   :  { %v2013_v45 = vsel %vm1965_vm11, %v1941_v5, %v1989_v21  ;;  %v1944_v4 = vadd.f32 %v3652_v6, %v1713_v0  ;;  %v2032_v26 = vsel %vm1984_vm5, %v1960_v62, %v2008_v14  ;;  %v2080_v0 = vsel %vm770_vm6, %v2052_v33, 0.0 }
 0x544   :  { %v2055_v42 = vsel %vm2037_vm12, %v2013_v45, 0.0  ;;  %vm1976_vm5 = vcmp.gt.f32.partialorder %v1952_v20, 0.0 }
 0x545   :  { %vm1968_vm2 = vcmp.gt.f32.partialorder %v1944_v4, 0.0  ;;  %v1992_v53 = vmul.f32 0.2, %v1944_v4  ;;  %v2078_v38 = vsel %vm770_vm6, %v2055_v42, 0.0 }
 0x546   :  { %v1724_v27 = vpop.permute.xlu1 %1723  ;;  %v2079_v6 = vadd.f32 %v2078_v38, %v2077_v51  ;;  %v2067_v38 = vsel %vm2037_vm12, %v3728_v22, 0.0  ;;  %vm1162_vm12 = vcmask 130112  }
 0x547   :  { %v2016_v28 = vsel %vm1968_vm2, %v1944_v4, %v1992_v53  ;;  %v1946_v17 = vadd.f32 %v3669_v59, %v1724_v27  ;;  %v2074_v59 = vsel %vm2038_vm15, %v2032_v26, 0.0  ;;  %v2082_v4 = vadd.f32 %v2081_v63, %v2080_v0 }
 0x548   :  { %v3755_v25 = vsel %vm2115_vm14, %v2079_v6, -1e+30  ;;  %v2058_v41 = vsel %vm2034_vm10, %v2016_v28, 0.0  ;;  %v2113_v1 = vsel %vm770_vm6, %v2074_v59, 0.0  ;;  %v2095_v27 = vsel %vm770_vm6, %v2063_v11, 0.0 }
 0x549   :  { %vm1970_vm11 = vcmp.gt.f32.partialorder %v1946_v17, 0.0  ;;  %v1994_v36 = vmul.f32 0.2, %v1946_v17  ;;  %v2129_v18 = vsel %vm770_vm6, %v3755_v25, -inf  ;;  %v2090_v5 = vsel %vm770_vm6, %v2058_v41, 0.0 }
 0x54a   :  { %v1702_v48 = vpop.permute.xlu1 %1701  ;;  %2130 = vmax.xlane.f32.xlu1 %v2129_v18  ;;  %v2114_v19 = vadd.f32 %v2113_v1, %v2112_v12 }
 0x54b   :  { %v2018_v52 = vsel %vm1970_vm11, %v1946_v17, %v1994_v36  ;;  %v1942_v57 = vadd.f32 %v3699_v9, %v1702_v48  ;;  %v2000_v9 = vmul.f32 0.2, %v1952_v20 }
 0x54c   :  { %v2060_v34 = vsel %vm2036_vm1, %v2018_v52, 0.0  ;;  %v2128_v17 = vsel %vm2116_vm13, %v2114_v19, -1e+30 }
 0x54d   :  { %vm1966_vm4 = vcmp.gt.f32.partialorder %v1942_v57, 0.0  ;;  %v1990_v62 = vmul.f32 0.2, %v1942_v57  ;;  %v2091_v7 = vsel %vm770_vm6, %v2060_v34, 0.0  ;;  %v2024_v6 = vsel %vm1976_vm5, %v1952_v20, %v2000_v9 }
 0x54e   :  { %v1753_v2 = vpop.permute.xlu1 %1752  ;;  %v2092_v39 = vadd.f32 %v2091_v7, %v2090_v5  ;;  %v2150_v59 = vsel %vm770_vm6, %v2128_v17, -inf  ;;  %v2098_v20 = vsel %vm770_vm6, %v2067_v38, 0.0  ;;  %v2066_v41 = vsel %vm2036_vm1, %v2024_v6, 0.0 }
 0x54f   :  { %v2014_v21 = vsel %vm1966_vm4, %v1942_v57, %v1990_v62  ;;  %v1951_v14 = vadd.f32 %v3721_v50, %v1753_v2  ;;  %v2101_v57 = vsel %vm770_vm6, %v2066_v41, 0.0 }
 0x550   :  { %v2094_v51 = vadd.f32 %v2093_v44, %v2092_v39  ;;  %v2056_v45 = vsel %vm2038_vm15, %v2014_v21, 0.0 }
 0x551   :  { %vm1975_vm3 = vcmp.gt.f32.partialorder %v1951_v14, 0.0  ;;  %v1999_v23 = vmul.f32 0.2, %v1951_v14  ;;  %v2083_v42 = vsel %vm770_vm6, %v2056_v45, 0.0 }
 0x552   :  { %v1746_v24 = vpop.permute.xlu1 %1745  ;;  %v3790_v53 = vsel %vm2116_vm13, %v2094_v51, -1e+30  ;;  %v2084_v50 = vadd.f32 %v2083_v42, %v2082_v4 }
 0x553   :  { %v2023_v54 = vsel %vm1975_vm3, %v1951_v14, %v1999_v23  ;;  %v1950_v46 = vadd.f32 %v3713_v40, %v1746_v24  ;;  %v2138_v26 = vsel %vm770_vm6, %v3790_v53, -inf }
 0x554   :  { %v2065_v58 = vsel %vm2035_vm7, %v2023_v54, 0.0  ;;  %2139 = vmax.xlane.f32.xlu1 %v2138_v26  ;;  %v2122_v28 = vsel %vm2116_vm13, %v2084_v50, -1e+30 }
 0x555   :  { %vm1974_vm8 = vcmp.gt.f32.partialorder %v1950_v46, 0.0  ;;  %v1998_v22 = vmul.f32 0.2, %v1950_v46  ;;  %v2132_v40 = vsel %vm770_vm6, %v2122_v28, -inf  ;;  %v2096_v56 = vsel %vm770_vm6, %v2065_v58, 0.0 }
 0x556   :  { %v1768_v35 = vpop.permute.xlu1 %1767  ;;  %2133 = vmax.xlane.f32.xlu0 %v2132_v40  ;;  %v2097_v15 = vadd.f32 %v2096_v56, %v2095_v27 }
 0x557   :  { %v2022_v36 = vsel %vm1974_vm8, %v1950_v46, %v1998_v22  ;;  %v1954_v18 = vadd.f32 %v3682_v10, %v1768_v35 }
 0x558   :  { %v2064_v48 = vsel %vm2034_vm10, %v2022_v36, 0.0  ;;  %2151 = vmax.xlane.f32.xlu1 %v2150_v59  ;;  %v2099_v49 = vadd.f32 %v2098_v20, %v2097_v15  ;;  %vm1426_vm10 = vcmask 261312  }
 0x559   :  { %vm1978_vm7 = vcmp.gt.f32.partialorder %v1954_v18, 0.0  ;;  %v2002_v43 = vmul.f32 0.2, %v1954_v18  ;;  %v2100_v55 = vsel %vm770_vm6, %v2064_v48, 0.0 }
 0x55a   :  { %v2125_v33 = vsel %vm2115_vm14, %v2099_v49, -1e+30  ;;  %v2102_v61 = vadd.f32 %v2101_v57, %v2100_v55  ;;  %vm1294_vm14 = vcmask 195712  }
 0x55b   :  { %v2026_v10 = vsel %vm1978_vm7, %v1954_v18, %v2002_v43  ;;  %v2141_v52 = vsel %vm770_vm6, %v2125_v33, -inf }
 0x55c   :  { %2142 = vmax.xlane.f32.xlu0 %v2141_v52  ;;  %v2068_v34 = vsel %vm2038_vm15, %v2026_v10, 0.0 }
 0x55d   :  { %v2103_v63 = vsel %vm770_vm6, %v2068_v34, 0.0 }
 0x55e   :  { %v2104_v1 = vadd.f32 %v2103_v63, %v2102_v61 }
 0x560   :  { %v2126_v62 = vsel %vm2116_vm13, %v2104_v1, -1e+30 }
 0x561   :  { %v2144_v5 = vsel %vm770_vm6, %v2126_v62, -inf }
 0x562   :  { %2145 = vmax.xlane.f32.xlu0 %v2144_v5 }
 0x5c0   :  { %v2149_v8 = vpop.xlane.xlu1 %2148 }
 0x5c1   :  { %v2159_v7 = vsub.f32 %v3678_v60, %v2149_v8 }
 0x5c3   :  { %v2173_v11 = vmul.f32 1.442695, %v2159_v7 }
 0x5c5   :  { %3091 = vpow2.f32 %v2173_v11 }
 0x5cd   :  { %v2137_v9 = vpop.xlane.xlu0 %2136 }
 0x5ce   :  { %v2155_v39 = vsub.f32 %v3733_v37, %v2137_v9 }
 0x5cf   :  { %v3826_v2 = vpop.eup %3091 }
 0x5d0   :  { %v2195_v12 = vsel %vm770_vm6, %v3826_v2, 0.0  ;;  %v2165_v21 = vmul.f32 1.442695, %v2155_v39 }
 0x5d1   :  { %2196 = vadd.xlane.f32.xlu1 %v2195_v12 }
 0x5d2   :  { %3093 = vpow2.f32 %v2165_v21 }
 0x5d7   :  { %v2131_v16 = vpop.xlane.xlu1 %2130 }
 0x5d8   :  { %v2153_v14 = vsub.f32 %v3755_v25, %v2131_v16 }
 0x5da   :  { %v2161_v44 = vmul.f32 1.442695, %v2153_v14 }
 0x5dc   :  { %3095 = vpow2.f32 %v2161_v44  ;;  %v3094_v0 = vpop.eup %3093 }
 0x5dd   :  { %v2183_v60 = vsel %vm770_vm6, %v3094_v0, 0.0 }
 0x5de   :  { %2184 = vadd.xlane.f32.xlu1 %v2183_v60 }
 0x5e1   :  { %v2140_v51 = vpop.xlane.xlu1 %2139 }
 0x5e2   :  { %v2156_v45 = vsub.f32 %v3790_v53, %v2140_v51 }
 0x5e3   :  { %v2134_v4 = vpop.xlane.xlu0 %2133 }
 0x5e4   :  { %v2167_v37 = vmul.f32 1.442695, %v2156_v45  ;;  %v2154_v19 = vsub.f32 %v2122_v28, %v2134_v4 }
 0x5e5   :  { %v2152_v23 = vpop.xlane.xlu1 %2151 }
 0x5e6   :  { %v3096_v42 = vpop.eup %3095  ;;  %3097 = vpow2.f32 %v2167_v37  ;;  %v2163_v24 = vmul.f32 1.442695, %v2154_v19  ;;  %v2160_v50 = vsub.f32 %v2128_v17, %v2152_v23 }
 0x5e7   :  { %v2177_v38 = vsel %vm770_vm6, %v3096_v42, 0.0 }
 0x5e8   :  { %3099 = vpow2.f32 %v2163_v24  ;;  %v2175_v25 = vmul.f32 1.442695, %v2160_v50  ;;  %2178 = vadd.xlane.f32.xlu0 %v2177_v38  ;;  %v1284_v24 = vmax.f32 %v3576_v3, 0.0  ;;  %v1285_v50 = vmax.f32 %v3574_v30, 0.0 }
 0x5e9   :  { %v2143_v54 = vpop.xlane.xlu0 %2142  ;;  %v1417_v38 = vmax.f32 %v3600_v47, 0.0 }
 0x5ea   :  { %3101 = vpow2.f32 %v2175_v25  ;;  %v2157_v46 = vsub.f32 %v2125_v33, %v2143_v54 }
 0x5ec   :  { %v2169_v26 = vmul.f32 1.442695, %v2157_v46 }
 0x5ee   :  { %3103 = vpow2.f32 %v2169_v26 }
 0x5ef   :  { %v2146_v27 = vpop.xlane.xlu0 %2145 }
 0x5f0   :  { %v3098_v53 = vpop.eup %3097  ;;  %v2158_v6 = vsub.f32 %v2126_v62, %v2146_v27 }
 0x5f1   :  { %v2186_v58 = vsel %vm770_vm6, %v3098_v53, 0.0 }
 0x5f2   :  { %v3100_v28 = vpop.eup %3099  ;;  %v2171_v22 = vmul.f32 1.442695, %v2158_v6  ;;  %2187 = vadd.xlane.f32.xlu1 %v2186_v58 }
 0x5f3   :  { %v2180_v17 = vsel %vm770_vm6, %v3100_v28, 0.0 }
 0x5f4   :  { %v3837_v40 = vpop.eup %3101  ;;  %3105 = vpow2.f32 %v2171_v22  ;;  %2181 = vadd.xlane.f32.xlu0 %v2180_v17 }
 0x5f5   :  { %v2198_v56 = vsel %vm770_vm6, %v3837_v40, 0.0 }
 0x5f6   :  { %2199 = vadd.xlane.f32.xlu1 %v2198_v56 }
 0x5f8   :  { %v3104_v35 = vpop.eup %3103 }
 0x5f9   :  { %v2189_v15 = vsel %vm770_vm6, %v3104_v35, 0.0 }
 0x5fa   :  { %2190 = vadd.xlane.f32.xlu0 %v2189_v15 }
 0x5fe   :  { %v3106_v36 = vpop.eup %3105 }
 0x5ff   :  { %v2192_v18 = vsel %vm770_vm6, %v3106_v36, 0.0 }
 0x600   :  { %2193 = vadd.xlane.f32.xlu0 %v2192_v18 }
 0x607   :  { %3050 = vrot.lane.b32.xlu1 %v3258_v29, %s3148_s25 }
 0x60b   :  { %3055 = vrot.lane.b32.xlu1 %v3258_v29, %s3149_s9 }
 0x616   :  { %3045 = vrot.lane.b32.xlu0 %v3258_v29, %s3150_s17 }
 0x65e   :  { %v2197_v59 = vpop.xlane.xlu1 %2196 }
 0x66b   :  { %v2185_v20 = vpop.xlane.xlu1 %2184 }
 0x66c   :  { %3107 = vrcp.f32 %v2185_v20 }
 0x675   :  { %v2179_v41 = vpop.xlane.xlu0 %2178 }
 0x676   :  { %3109 = vrcp.f32 %v2179_v41  ;;  %v3108_v48 = vpop.eup %3107 }
 0x677   :  { %v2206_v49 = vmul.f32 %v3108_v48, %v3094_v0 }
 0x679   :  { %2335 = vxpose.xlu1.b32.start [1/2] (short) (narrow) %v2206_v49, 16 }
 0x67f   :  { %v2188_v43 = vpop.xlane.xlu1 %2187 }
 0x680   :  { %v3110_v55 = vpop.eup %3109  ;;  %3111 = vrcp.f32 %v2188_v43 }
 0x681   :  { %v2182_v33 = vpop.xlane.xlu0 %2181  ;;  %v2202_v10 = vmul.f32 %v3110_v55, %v3096_v42  ;;  %v1152_v42 = vmax.f32 %v3598_v32, 0.0  ;;  %v1153_v32 = vmax.f32 %v3596_v31, 0.0 }
 0x682   :  { %3113 = vrcp.f32 %v2182_v33 }
 0x683   :  { %v2200_v52 = vpop.xlane.xlu1 %2199  ;;  %2217 = vxpose.xlu0.b32.start [1/2] (short) (narrow) %v2202_v10, 16 }
 0x687   :  { %v3051_v57 = vpop.permute.xlu1 %3050  ;;  %v2191_v34 = vpop.xlane.xlu0 %2190 }
 0x688   :  { %v3053_v61 = vunpack.i.h.bf16 %v3051_v57  ;;  %v3052_v29 = vunpack.i.l.bf16 %v3051_v57  ;;  %3115 = vrcp.f32 %v2191_v34 }
 0x68a   :  { %v3112_v63 = vpop.eup %3111  ;;  %v3010_v1 = vpack.c.bf16 %v3053_v61, %v3052_v29 }
 0x68b   :  { %v2208_v62 = vmul.f32 %v3112_v63, %v3098_v53  ;;  %v3056_v11 = vpop.permute.xlu1 %3055 }
 0x68c   :  { %v3114_v5 = vpop.eup %3113  ;;  %3011 = vmatprep.subr.bf16.mxu0 %v3010_v1  ;;  %v3058_v12 = vunpack.i.h.bf16 %v3056_v11  ;;  %v3057_v21 = vunpack.i.l.bf16 %v3056_v11 }
 0x68d   :  { %2336 = vxpose.xlu1.b32.end [2/2] (short) (narrow) %v2208_v62, 16  ;;  %v2194_v8 = vpop.xlane.xlu0 %2193  ;;  %v2204_v7 = vmul.f32 %v3114_v5, %v3100_v28 }
 0x68e   :  { %3117 = vrcp.f32 %v2194_v8  ;;  %v3014_v60 = vpack.c.bf16 %v3058_v12, %v3057_v21 }
 0x68f   :  { %2218 = vxpose.xlu0.b32.end [2/2] (short) (narrow) %v2204_v7, 16  ;;  %3119 = vrcp.f32 %v2197_v59 }
 0x690   :  { %3121 = vrcp.f32 %v2200_v52 }
 0x691   :  { %v3046_v9 = vpop.permute.xlu0 %3045 }
 0x692   :  { %v3116_v39 = vpop.eup %3115  ;;  %v3048_v16 = vunpack.i.h.bf16 %v3046_v9  ;;  %v3047_v14 = vunpack.i.l.bf16 %v3046_v9 }
 0x693   :  { %v2210_v44 = vmul.f32 %v3116_v39, %v3104_v35 }
 0x694   :  { %v3006_v0 = vpack.c.bf16 %v3048_v16, %v3047_v14 }
 0x695   :  { %2468 = vxpose.xlu0.b32.start [1/2] (short) (narrow) %v2210_v44, 16 }
 0x696   :  { %3007 = vmatprep.subr.bf16.mxu1 %v3006_v0 }
 0x697   :  { %3009 = vmatpush3.bf16.msra.mxu1 %v3006_v0 }
 0x698   :  { %v3118_v51 = vpop.eup %3117  ;;  %3015 = vmatprep.subr.bf16.mxu1 %v3014_v60 }
 0x699   :  { %v2212_v45 = vmul.f32 %v3118_v51, %v3106_v36  ;;  %v3120_v4 = vpop.eup %3119 }
 0x69a   :  { %v2214_v37 = vmul.f32 %v3120_v4, %v3826_v2  ;;  %v3122_v19 = vpop.eup %3121  ;;  %v1416_v2 = vmax.f32 %v3602_v13, 0.0 }
 0x69b   :  { %2469 = vxpose.xlu0.b32.end [2/2] (short) (narrow) %v2212_v45, 16  ;;  %v2216_v23 = vmul.f32 %v3122_v19, %v3837_v40 }
 0x69f   :  { %2599 = vxpose.xlu0.b32.start [1/2] (short) (narrow) %v2214_v37, 16 }
 0x6a3   :  { %2600 = vxpose.xlu0.b32.end [2/2] (short) (narrow) %v2216_v23, 16 }
 0x6ab   :  { %1156 = vrot.lane.b32.xlu1 %v1152_v42, %s3151_s1 }
 0x6af   :  { %1288 = vrot.lane.b32.xlu1 %v1284_v24, %s3152_s19 }
 0x6b3   :  { %1290 = vrot.lane.b32.xlu1 %v1285_v50, %s3152_s19 }
 0x6b7   :  { %1420 = vrot.lane.b32.xlu1 %v1416_v2, %s3153_s20 }
 0x6bb   :  { %1422 = vrot.lane.b32.xlu1 %v1417_v38, %s3153_s20 }
 0x6cc   :  { %1158 = vrot.lane.b32.xlu0 %v1153_v32, %s3151_s1 }
 0x709   :  { %v2351_v3 = vpop.trf.xlu1 }
 0x70a   :  { %2937 = vmatprep.mubr.msk.f32.mxu1 %vm770_vm6, %v2351_v3 }
 0x70b   :  { %v2233_v25 = vpop.trf.xlu0 }
 0x70c   :  { %2930 = vmatprep.mubr.msk.f32.mxu0 %vm770_vm6, %v2233_v25 }
 0x70d   :  { %v2352_v30 = vpop.trf.xlu1 }
 0x70e   :  { %2938 = vmatmul.mubr.msk.f32.vlgmr.msra.gmra.mrb[10].mxu1 %vm770_vm6, %v2352_v30 }
 0x70f   :  { %3017 = vmatpush3.bf16.msra.mxu1 %v3014_v60  ;;  %v2234_v13 = vpop.trf.xlu0 }
 0x710   :  { %2931 = vmatmul.mubr.msk.f32.vlgmr.msra.gmra.mrb[10].mxu0 %vm770_vm6, %v2234_v13 }
 0x711   :  { %3013 = vmatpush3.bf16.msra.mxu0 %v3010_v1 }
 0x717   :  { %v2484_v47 = vpop.trf.xlu0 }
 0x718   :  { %2944 = vmatprep.mubr.msk.f32.mxu0 %vm770_vm6, %v2484_v47 }
 0x71b   :  { %v2485_v31 = vpop.trf.xlu0 }
 0x71c   :  { %2945 = vmatmul.mubr.msk.f32.vlgmr.msra.gmra.mrb[12].mxu0 %vm770_vm6, %v2485_v31 }
 0x71d   :  { %v1157_v54 = vpop.permute.xlu1 %1156 }
 0x71e   :  { %1163 = vst.msk [vmem:[#allocation2] sm:$0xff] %vm1162_vm12, %v1157_v54 }
 0x71f   :  { %v2615_v46 = vpop.trf.xlu0 }
 0x720   :  { %2951 = vmatprep.mubr.msk.f32.mxu1 %vm770_vm6, %v2615_v46 }
 0x721   :  { %v1289_v26 = vpop.permute.xlu1 %1288 }
 0x722   :  { %1295 = vst.msk [vmem:[#allocation2] sm:$0xff] %vm1294_vm14, %v1289_v26 }
 0x723   :  { %v2616_v27 = vpop.trf.xlu0 }
 0x724   :  { %2952 = vmatmul.mubr.msk.f32.vlgmr.msra.gmra.mrb[12].mxu1 %vm770_vm6, %v2616_v27 }
 0x725   :  { %v1291_v53 = vpop.permute.xlu1 %1290 }
 0x729   :  { %v1421_v6 = vpop.permute.xlu1 %1420 }
 0x72a   :  { %1427 = vst.msk [vmem:[#allocation2] sm:$0xff] %vm1426_vm10, %v1421_v6 }
 0x72d   :  { %v1423_v28 = vpop.permute.xlu1 %1422 }
 0x73e   :  { %v1159_v58 = vpop.permute.xlu0 %1158 }
 0x73f   :  { %1164 = vst.msk [vmem:[#allocation2 + $0x8] sm:$0xff] %vm1162_vm12, %v1159_v58 }
 0x740   :  { %1296 = vst.msk [vmem:[#allocation2 + $0x8] sm:$0xff] %vm1294_vm14, %v1291_v53 }
 0x741   :  { %1428 = vst.msk [vmem:[#allocation2 + $0x8] sm:$0xff] %vm1426_vm10, %v1423_v28 }
 0x7e1   :  { %v2939_v22 = vpop.f32.mrb[10].mxu1 }
 0x7e2   :  { %v2457_v17 = vmax.f32 %v2939_v22, 0.0  ;;  %v2447_v40 = vpop.f32.mrb[11].mxu1 }
 0x7e3   :  { %v2932_v56 = vpop.f32.mrb[10].mxu0  ;;  %v2456_v35 = vmax.f32 %v2447_v40, 0.0 }
 0x7e4   :  { %v2331_v15 = vmax.f32 %v2932_v56, 0.0  ;;  %v2321_v36 = vpop.f32.mrb[11].mxu0  ;;  %2462 = vrot.lane.b32.xlu1 %v2457_v17, %s3151_s1 }
 0x7e5   :  { %v2330_v18 = vmax.f32 %v2321_v36, 0.0  ;;  %2460 = vrot.lane.b32.xlu0 %v2456_v35, %s3151_s1 }
 0x7e6   :  { %2334 = vst.msk [vmem:[#allocation2 + $0x18] sm:$0xff] %vm1028_vm0, %v2331_v15 }
 0x7e7   :  { %2333 = vst.msk [vmem:[#allocation2 + $0x10] sm:$0xff] %vm1028_vm0, %v2330_v18 }
 0x7ef   :  { %v2946_v59 = vpop.f32.mrb[12].mxu0 }
 0x7f0   :  { %v2588_v20 = vmax.f32 %v2946_v59, 0.0  ;;  %v2578_v41 = vpop.f32.mrb[13].mxu0 }
 0x7f1   :  { %v2587_v48 = vmax.f32 %v2578_v41, 0.0 }
 0x7f2   :  { %2593 = vrot.lane.b32.xlu1 %v2588_v20, %s3152_s19 }
 0x7f3   :  { %2591 = vrot.lane.b32.xlu0 %v2587_v48, %s3152_s19 }
 0x7f7   :  { %v2953_v49 = vpop.f32.mrb[12].mxu1 }
 0x7f8   :  { %v2719_v43 = vmax.f32 %v2953_v49, 0.0  ;;  %v2709_v55 = vpop.f32.mrb[13].mxu1 }
 0x7f9   :  { %v2718_v33 = vmax.f32 %v2709_v55, 0.0 }
 0x7fa   :  { %2724 = vrot.lane.b32.xlu1 %v2719_v43, %s3153_s20 }
 0x7fb   :  { %2722 = vrot.lane.b32.xlu0 %v2718_v33, %s3153_s20 }
 0x856   :  { %v2463_v10 = vpop.permute.xlu1 %2462 }
 0x857   :  { %2467 = vst.msk [vmem:[#allocation2 + $0x18] sm:$0xff] %vm1162_vm12, %v2463_v10  ;;  %v2461_v52 = vpop.permute.xlu0 %2460 }
 0x858   :  { %2466 = vst.msk [vmem:[#allocation2 + $0x10] sm:$0xff] %vm1162_vm12, %v2461_v52 }
 0x864   :  { %v2594_v57 = vpop.permute.xlu1 %2593 }
 0x865   :  { %2598 = vst.msk [vmem:[#allocation2 + $0x18] sm:$0xff] %vm1294_vm14, %v2594_v57  ;;  %v2592_v34 = vpop.permute.xlu0 %2591 }
 0x866   :  { %2597 = vst.msk [vmem:[#allocation2 + $0x10] sm:$0xff] %vm1294_vm14, %v2592_v34 }
 0x86c   :  { %v2725_v61 = vpop.permute.xlu1 %2724 }
 0x86d   :  { %2729 = vst.msk [vmem:[#allocation2 + $0x18] sm:$0xff] %vm1426_vm10, %v2725_v61  ;;  %v2723_v29 = vpop.permute.xlu0 %2722 }
 0x86e   :  { %2728 = vst.msk [vmem:[#allocation2 + $0x10] sm:$0xff] %vm1426_vm10, %v2723_v29 }
 0x86f   :  { %3134 = shalt.err (!%p3131_p4)
}
 0x870   :  { %s3135_s24 = scalar_lea.hbm %s3909_s5, 512 }
 0x871   :  { %p3136_p5 = scmp.ne.s32.totalorder %s3909_s5, %s3135_s24  ;;  %p3139_p6 = scmp.lt.u32.totalorder %s3135_s24, %s3909_s5 }
 0x873   :  { %p3141_p7 = pnand %p3139_p6, %p3136_p5 }
 0x875   :  { %3144 = shalt.err (!%p3141_p7)
}
 0x876   :  { %s3155_s29 = smov 128  }
 0x877   :  { %2741 = dma.vmem_to_hbm [thread:$0]  %s2736_s22, 512, %s3909_s5, [#allocation3], %s3155_s29, %s3155_s29, %s3151_s1  }
 0x878   :  { %3145 = dma.done.wait [#allocation3], 512  }
 0x879   :  { %3146 = vsyncadd [#allocation3], 4294966784 }
 0x87a   :  { %2745 = vsyncpa [#allocation3], 1 }

</bundles_post_ra>
